<compile_context>
chip_gen: v7x
topology: tpu7x:2x2x1
jax: 0.10.0
libtpu: 0.0.40
codegen_flags: <defaults>
</compile_context>

<pallas_src>
import functools

import jax
import jax.numpy as jnp
from jax.experimental import pallas as pl
from jax.experimental.pallas import tpu as pltpu


_PARAM_ORDER = ("ln1_w", "ln1_b", "wqkv_t", "bqkv", "wo_t", "bo",
                "ln2_w", "ln2_b", "wfc_t", "bfc", "wproj_t", "bproj")


# ----------------------------------------------------------------------------
# Device / budget helpers.
# ----------------------------------------------------------------------------
def _device_kind():
    try:
        return jax.devices()[0].device_kind.lower()
    except Exception:
        return ""


def _is_v7(kind):
    return "7" in kind


def _gelu_low_precision(kind):
    # bf16 VPU/EUP exists on v6e/v7x; on v5e and older it would only add
    # converts, so keep the QuickGELU gate in f32 there.
    for tag in ("v5 lite", "v5e", "v5lite", "v4", "v3", "v2"):
        if tag in kind:
            return False
    return True


def _vmem_budget_bytes():
    """~80% of physical VMEM (leave headroom for compiler-internal scratch)."""
    try:
        info = pltpu.get_tpu_info()
        cap = getattr(info, "vmem_capacity_bytes", None)
        if cap:
            return max(32 * 1024 * 1024,
                       min(int(cap) * 4 // 5, 112 * 1024 * 1024))
    except Exception:
        pass
    return 96 * 1024 * 1024


def _pick_block_b(B, N, C, *, target_rows, vmem_budget, min_grid_b=1):
    """Batch rows per program: biggest divisor of B whose M=Bt*N hits the
    per-generation target and (roughly) fits the VMEM budget; on v7x prefer
    >=2 grid steps along batch so both TensorCores are used."""
    divisors = [d for d in range(1, B + 1) if B % d == 0]

    def est_bytes(bt):
        M = bt * N
        # rough f32 working set: in/out activation blocks, qkv, mlp hidden,
        # one head's attention scores.
        return 4 * (4 * M * C + 3 * M * C + 4 * M * C + bt * N * N)

    best = 1
    for d in divisors:
        if d * N <= max(target_rows, N) and est_bytes(d) <= vmem_budget // 2:
            best = d
    if min_grid_b > 1 and B >= min_grid_b and B // best < min_grid_b:
        cands = [d for d in divisors if B // d >= min_grid_b]
        if cands:
            best = max(cands)
    return best


def _block_spec(block_shape, index_map, single_buffer=False):
    if single_buffer:
        try:
            return pl.BlockSpec(block_shape, index_map,
                                pipeline_mode=pl.Buffered(1))
        except TypeError:   # older jax without pipeline_mode kwarg
            pass
    return pl.BlockSpec(block_shape, index_map)


# ----------------------------------------------------------------------------
# Pallas kernel: a stack of L ResidualAttentionBlocks for one batch block.
# Grid = (batch_blocks, L); the residual stream lives in o_ref across l.
# ----------------------------------------------------------------------------
def _resblock_stack_kernel(num_heads, eps, n_valid, gelu_low_prec,
                           x_ref, ln1_w, ln1_b, wqkv_t, bqkv, wo_t, bo,
                           ln2_w, ln2_b, wfc_t, bfc, wproj_t, bproj,
                           o_ref):
    Bt, N, C = x_ref.shape
    M = Bt * N
    H = num_heads
    hc = C // H
    mm_dtype = wqkv_t.dtype          # bf16 weights -> bf16 MXU inputs, f32 acc

    l = pl.program_id(1)

    # At the first layer of this batch block, seed the resident residual
    # stream (the output block, which is revisited across the layer axis).
    @pl.when(l == 0)
    def _():
        o_ref[...] = x_ref[...]

    x = o_ref[...].reshape(M, C)     # f32 residual stream

    def layernorm(v, w_ref, b_ref):  # f32 statistics
        mu = jnp.mean(v, axis=-1, keepdims=True)
        var = jnp.mean(jnp.square(v - mu), axis=-1, keepdims=True)
        return (v - mu) * jax.lax.rsqrt(var + eps) * w_ref[...] + b_ref[...]

    # ---------------- attention branch ----------------
    h = layernorm(x, ln1_w, ln1_b)
    # F.linear with pre-transposed [C, 3C] weight; Q columns pre-scaled.
    qkv = jnp.dot(h.astype(mm_dtype), wqkv_t[...],
                  preferred_element_type=jnp.float32) + bqkv[...]
    q3 = qkv[:, :C].reshape(Bt, N, C)
    k3 = qkv[:, C:2 * C].reshape(Bt, N, C)
    v3 = qkv[:, 2 * C:].reshape(Bt, N, C)

    if n_valid < N:   # static: only built when the host padded the sequence
        key_pad = jax.lax.broadcasted_iota(jnp.int32, (1, 1, N), 2) >= n_valid
    else:
        key_pad = None

    # Per-head attention with the output projection folded into the loop
    # (no lane-axis concat of head outputs).
    # TODO(synk): fully batching heads needs an in-kernel lane split of C
    # into (heads, hc) which Mosaic does not lower reliably for hc < 128;
    # heads remain a static loop of Bt-batched MXU einsums.
    attn_out = jnp.zeros((M, C), jnp.float32)
    for hidx in range(H):
        sl = slice(hidx * hc, (hidx + 1) * hc)
        qh = q3[:, :, sl].astype(mm_dtype)
        kh = k3[:, :, sl].astype(mm_dtype)
        vh = v3[:, :, sl].astype(mm_dtype)
        s = jnp.einsum('bqd,bkd->bqk', qh, kh,
                       preferred_element_type=jnp.float32)      # [Bt, N, N]
        if key_pad is not None:
            s = jnp.where(key_pad, -1e30, s)
        s = s - jnp.max(s, axis=-1, keepdims=True)
        p = jnp.exp(s)
        p = p * pl.reciprocal(jnp.sum(p, axis=-1, keepdims=True), approx=True)
        oh = jnp.einsum('bqk,bkd->bqd', p.astype(mm_dtype), vh,
                        preferred_element_type=jnp.float32)     # [Bt, N, hc]
        attn_out = attn_out + jnp.dot(
            oh.reshape(M, hc).astype(mm_dtype),
            wo_t[hidx * hc:(hidx + 1) * hc, :],
            preferred_element_type=jnp.float32)
    x = x + attn_out + bo[...]

    # ---------------- MLP branch ----------------
    h2 = layernorm(x, ln2_w, ln2_b)
    m = jnp.dot(h2.astype(mm_dtype), wfc_t[...],
                preferred_element_type=jnp.float32) + bfc[...]
    if gelu_low_prec:
        mg = m.astype(mm_dtype)                     # bf16 QuickGELU (v6e/v7x)
        act = mg * jax.nn.sigmoid(1.702 * mg)
    else:
        act = (m * jax.nn.sigmoid(1.702 * m)).astype(mm_dtype)
    m2 = jnp.dot(act, wproj_t[...],
                 preferred_element_type=jnp.float32) + bproj[...]

    o_ref[...] = (x + m2).reshape(Bt, N, C)


# ----------------------------------------------------------------------------
# Host-side parameter preparation (once): transpose to [in, out], pre-scale Q,
# cast matmul weights to bf16, reshape 1-D params to (1, dim) for stacking.
# ----------------------------------------------------------------------------
def _prepare_kernel_params(p, num_heads, matmul_dtype=jnp.bfloat16):
    f32 = jnp.float32
    C = p["wo"].shape[0]
    hc = C // num_heads
    q_scale = float(hc) ** -0.5
    col_scale = jnp.concatenate([jnp.full((C,), q_scale, f32),
                                 jnp.ones((2 * C,), f32)])
    wqkv_t = jnp.asarray(p["wqkv"], f32).T * col_scale[None, :]   # [C, 3C]
    bqkv = jnp.asarray(p["bqkv"], f32) * col_scale

    def row(v):
        return jnp.asarray(v, f32).reshape(1, -1)

    return dict(
        ln1_w=row(p["ln1_w"]), ln1_b=row(p["ln1_b"]),
        wqkv_t=wqkv_t.astype(matmul_dtype),
        bqkv=row(bqkv),
        wo_t=jnp.asarray(p["wo"], f32).T.astype(matmul_dtype),    # [C, C]
        bo=row(p["bo"]),
        ln2_w=row(p["ln2_w"]), ln2_b=row(p["ln2_b"]),
        wfc_t=jnp.asarray(p["wfc"], f32).T.astype(matmul_dtype),  # [C, 4C]
        bfc=row(p["bfc"]),
        wproj_t=jnp.asarray(p["wproj"], f32).T.astype(matmul_dtype),  # [4C, C]
        bproj=row(p["bproj"]),
    )


def _stack_kernel_params(kparams_list):
    return {name: jnp.stack([kp[name] for kp in kparams_list], axis=0)
            for name in _PARAM_ORDER}


# ----------------------------------------------------------------------------
# Wrapper: run L fused ResidualAttentionBlocks over x with one pallas_call.
# ----------------------------------------------------------------------------
def res_blocks_pallas(x, stacked, num_heads):
    B, N, C = x.shape
    L = int(stacked["wqkv_t"].shape[0])
    n_valid = N
    Np = ((N + 7) // 8) * 8
    if Np != N:
        x = jnp.pad(x, ((0, 0), (0, Np - N), (0, 0)))

    kind = _device_kind()
    vmem_budget = _vmem_budget_bytes()
    target_rows = 256 if _is_v7(kind) else 512
    Bt = _pick_block_b(B, Np, C, target_rows=target_rows,
                       vmem_budget=vmem_budget,
                       min_grid_b=2 if _is_v7(kind) else 1)
    num_b = B // Bt

    kernel = functools.partial(_resblock_stack_kernel, num_heads, 1e-5,
                               n_valid, _gelu_low_precision(kind))

    in_specs = [pl.BlockSpec((Bt, Np, C), lambda b, l: (b, 0, 0))]
    single_buf_weights = (L == 1)          # invariant blocks -> single buffer
    for name in _PARAM_ORDER:
        arr = stacked[name]
        block_shape = (None,) + tuple(arr.shape[1:])
        in_specs.append(_block_spec(block_shape, lambda b, l: (l, 0, 0),
                                    single_buffer=single_buf_weights))

    weight_bytes = sum(int(stacked[n].size) * int(stacked[n].dtype.itemsize)
                       for n in _PARAM_ORDER)
    flops = L * (2 * B * Np * C * (3 * C + C + 4 * C + 4 * C)
                 + 4 * B * Np * Np * C)
    transc = L * (B * num_heads * Np * Np + B * Np * 4 * C)
    bytes_acc = weight_bytes * num_b + 2 * B * Np * C * 4
    cost = pl.CostEstimate(flops=int(flops), transcendentals=int(transc),
                           bytes_accessed=int(bytes_acc))

    out = pl.pallas_call(
        kernel,
        out_shape=jax.ShapeDtypeStruct((B, Np, C), jnp.float32),
        grid=(num_b, L),
        in_specs=in_specs,
        out_specs=pl.BlockSpec((Bt, Np, C), lambda b, l: (b, 0, 0)),
        compiler_params=pltpu.CompilerParams(
            dimension_semantics=("parallel", "arbitrary"),
            vmem_limit_bytes=vmem_budget),
        cost_estimate=cost,
    )(x, *[stacked[n] for n in _PARAM_ORDER])

    return out[:, :N] if Np != N else out


# ----------------------------------------------------------------------------
# TransformerL forward (prompt glue in plain JAX, blocks fused in Pallas).
# ----------------------------------------------------------------------------
def transformer_l_forward(layer_params, num_heads, x, size, prompts_in,
                          prompts_outs, T, prompts_pos, prompts_pos_outlayer,
                          matmul_dtype=jnp.bfloat16):
    kparams = [_prepare_kernel_params(p, num_heads, matmul_dtype)
               for p in layer_params]
    L = len(kparams)

    def stack(lo, hi):
        return _stack_kernel_params(kparams[lo:hi])

    # enable_checkpoint=False path of TransformerL.forward
    if T == 0:
        prompts = jnp.concatenate([prompts_outs, prompts_in], axis=1) + prompts_pos
        x = jnp.concatenate([prompts, x], axis=1)
        x = res_blocks_pallas(x, stack(0, L), num_heads)
    else:
        # layer 0 with prompt injection before it
        prompts = (jnp.concatenate([prompts_outs[:, :, 0], prompts_in], axis=1)
                   + prompts_pos)
        x = jnp.concatenate([prompts, x], axis=1)
        x = res_blocks_pallas(x, stack(0, 1), num_heads)
        if L > 1:
            # prompt re-injection between layer 0 and layer 1, then layers 1..L-1
            prompts_out = prompts_outs[:, :, 1] + prompts_pos_outlayer
            prompts_out = 0.5 * prompts_out + 0.5 * x[:, :4]
            x = jnp.concatenate([prompts_out, x[:, 4:]], axis=1)
            x = res_blocks_pallas(x, stack(1, L), num_heads)
    return x


# ----------------------------------------------------------------------------
# Pure-JAX reference (mm_dtype / gelu_dtype mirror the kernel's precision so
# the correctness check stays tight).
# ----------------------------------------------------------------------------
def _resblock_ref(x, p, num_heads, mm_dtype=jnp.float32, gelu_dtype=jnp.float32):
    B, N, C = x.shape
    hc = C // num_heads
    scale = hc ** -0.5

    def ln(v, w, b):
        mu = v.mean(-1, keepdims=True)
        var = ((v - mu) ** 2).mean(-1, keepdims=True)
        return (v - mu) / jnp.sqrt(var + 1e-5) * w + b

    def mm(a, w_t):
        return jnp.dot(a.astype(mm_dtype), w_t.astype(mm_dtype),
                       preferred_element_type=jnp.float32)

    h = ln(x, p["ln1_w"], p["ln1_b"])
    qkv = mm(h, p["wqkv"].T) + p["bqkv"]
    qkv = qkv.reshape(B, N, 3, num_heads, hc).transpose(2, 0, 3, 1, 4)
    q, k, v = qkv[0] * scale, qkv[1], qkv[2]
    attn = jnp.einsum('bhqd,bhkd->bhqk', q.astype(mm_dtype), k.astype(mm_dtype),
                      preferred_element_type=jnp.float32)
    attn = jax.nn.softmax(attn, axis=-1)
    o = jnp.einsum('bhqk,bhkd->bhqd', attn.astype(mm_dtype), v.astype(mm_dtype),
                   preferred_element_type=jnp.float32)
    o = o.transpose(0, 2, 1, 3).reshape(B, N, C)
    o = mm(o, p["wo"].T) + p["bo"]
    x = x + o
    h2 = ln(x, p["ln2_w"], p["ln2_b"])
    m = mm(h2, p["wfc"].T) + p["bfc"]
    mg = m.astype(gelu_dtype)
    m = (mg * jax.nn.sigmoid(1.702 * mg)).astype(jnp.float32)
    m = mm(m, p["wproj"].T) + p["bproj"]
    return x + m


def _transformer_ref(layer_params, num_heads, x, size, prompts_in,
                     prompts_outs, T, prompts_pos, prompts_pos_outlayer,
                     mm_dtype=jnp.float32, gelu_dtype=jnp.float32):
    if T == 0:
        prompts = jnp.concatenate([prompts_outs, prompts_in], axis=1) + prompts_pos
        x = jnp.concatenate([prompts, x], axis=1)
        for p in layer_params:
            x = _resblock_ref(x, p, num_heads, mm_dtype, gelu_dtype)
    else:
        for i, p in enumerate(layer_params):
            if i == 0:
                prompts = (jnp.concatenate([prompts_outs[:, :, i], prompts_in],
                                           axis=1) + prompts_pos)
                x = jnp.concatenate([prompts, x], axis=1)
            elif i == 1:
                prompts_out = prompts_outs[:, :, i] + prompts_pos_outlayer
                prompts_out = 0.5 * prompts_out + 0.5 * x[:, :4]
                x = jnp.concatenate([prompts_out, x[:, 4:]], axis=1)
            x = _resblock_ref(x, p, num_heads, mm_dtype, gelu_dtype)
    return x


# ----------------------------------------------------------------------------
# Deterministic parameter construction (matches PyTorch module shapes/layout).
# ----------------------------------------------------------------------------
def make_layer_params(key, width):
    C = width
    ks = jax.random.split(key, 8)
    xavier_bound = (6.0 / (3 * C + C)) ** 0.5        # xavier_uniform_ on [3C, C]
    return dict(
        ln1_w=jnp.ones((C,), jnp.float32) + 0.01 * jax.random.normal(ks[0], (C,)),
        ln1_b=0.01 * jax.random.normal(ks[1], (C,)),
        wqkv=jax.random.uniform(ks[2], (3 * C, C), jnp.float32,
                                minval=-xavier_bound, maxval=xavier_bound),
        bqkv=jnp.zeros((3 * C,), jnp.float32),        # constant_(in_proj_bias, 0)
        wo=0.05 * jax.random.normal(ks[3], (C, C)),
        bo=jnp.zeros((C,), jnp.float32),              # constant_(out_proj.bias, 0)
        ln2_w=jnp.ones((C,), jnp.float32) + 0.01 * jax.random.normal(ks[4], (C,)),
        ln2_b=0.01 * jax.random.normal(ks[5], (C,)),
        wfc=0.05 * jax.random.normal(ks[6], (4 * C, C)),
        bfc=jnp.zeros((4 * C,), jnp.float32),
        wproj=0.05 * jax.random.normal(ks[7], (C, 4 * C)),
        bproj=jnp.zeros((C,), jnp.float32),
    )


if __name__ == "__main__":
    width, heads, layers = 32, 4, 2
    B, N_x = 2, 8
    P_out, P_in = 4, 4            # x[:, :4] in the i==1 branch implies 4 out-prompts

    key = jax.random.PRNGKey(0)
    kp, kx, k1, k2, k3, k4 = jax.random.split(key, 6)
    layer_keys = jax.random.split(kp, layers)
    params = [make_layer_params(layer_keys[i], width) for i in range(layers)]

    x = jax.random.normal(kx, (B, N_x, width), jnp.float32)
    prompts_in = jax.random.normal(k1, (B, P_in, width), jnp.float32)
    prompts_outs = jax.random.normal(k2, (B, P_out, layers, width), jnp.float32)
    prompts_pos = jax.random.normal(k3, (B, P_out + P_in, width), jnp.float32)
    prompts_pos_outlayer = jax.random.normal(k4, (B, P_out, width), jnp.float32)
    size = (4, 2)   # unused by 'full' attention, passed through for signature parity

    gelu_dtype = (jnp.bfloat16 if _gelu_low_precision(_device_kind())
                  else jnp.float32)

    # ---- Test 1: T != 0 path (per-layer prompt injection, two segments) ----
    out1 = transformer_l_forward(params, heads, x, size, prompts_in,
                                 prompts_outs, 1, prompts_pos,
                                 prompts_pos_outlayer)
    out1 = jax.block_until_ready(out1)
    ref1 = _transformer_ref(params, heads, x, size, prompts_in,
                            prompts_outs, 1, prompts_pos, prompts_pos_outlayer,
                            mm_dtype=jnp.bfloat16, gelu_dtype=gelu_dtype)
    assert out1.shape == (B, P_out + P_in + N_x, width)
    assert out1.dtype == jnp.float32
    assert jnp.allclose(out1, ref1, atol=2e-2, rtol=3e-2), "T=1 mismatch"

    # ---- Test 2: T == 0 path (all layers fused into one grid call) ----
    prompts_outs_t0 = prompts_outs[:, :, 0]           # (B, 4, width)
    out0 = transformer_l_forward(params, heads, x, size, prompts_in,
                                 prompts_outs_t0, 0, prompts_pos,
                                 prompts_pos_outlayer)
    out0 = jax.block_until_ready(out0)
    ref0 = _transformer_ref(params, heads, x, size, prompts_in,
                            prompts_outs_t0, 0, prompts_pos,
                            prompts_pos_outlayer,
                            mm_dtype=jnp.bfloat16, gelu_dtype=gelu_dtype)
    assert out0.shape == (B, P_out + P_in + N_x, width)
    assert jnp.allclose(out0, ref0, atol=2e-2, rtol=3e-2), "T=0 mismatch"

    # ---- Test 3: non-multiple-of-8 sequence (host pad + key mask path) ----
    x7 = x[:, :7]
    outm = transformer_l_forward(params, heads, x7, size, prompts_in,
                                 prompts_outs_t0, 0, prompts_pos,
                                 prompts_pos_outlayer)
    outm = jax.block_until_ready(outm)
    refm = _transformer_ref(params, heads, x7, size, prompts_in,
                            prompts_outs_t0, 0, prompts_pos,
                            prompts_pos_outlayer,
                            mm_dtype=jnp.bfloat16, gelu_dtype=gelu_dtype)
    assert outm.shape == (B, P_out + P_in + 7, width)
    assert jnp.allclose(outm, refm, atol=2e-2, rtol=3e-2), "masked-pad mismatch"

    print("KERNEL_OK")
</pallas_src>

<mosaic_0001>
module attributes {stable_mosaic.version = 11 : i64} {
  func.func @_resblock_stack_kernel(%arg0: i32, %arg1: i32, %arg2: memref<2x16x32xf32, #tpu.memory_space<vmem>>, %arg3: memref<1x1x32xf32, #tpu.memory_space<vmem>>, %arg4: memref<1x1x32xf32, #tpu.memory_space<vmem>>, %arg5: memref<1x32x96xbf16, #tpu.memory_space<vmem>>, %arg6: memref<1x1x96xf32, #tpu.memory_space<vmem>>, %arg7: memref<1x32x32xbf16, #tpu.memory_space<vmem>>, %arg8: memref<1x1x32xf32, #tpu.memory_space<vmem>>, %arg9: memref<1x1x32xf32, #tpu.memory_space<vmem>>, %arg10: memref<1x1x32xf32, #tpu.memory_space<vmem>>, %arg11: memref<1x32x128xbf16, #tpu.memory_space<vmem>>, %arg12: memref<1x1x128xf32, #tpu.memory_space<vmem>>, %arg13: memref<1x128x32xbf16, #tpu.memory_space<vmem>>, %arg14: memref<1x1x32xf32, #tpu.memory_space<vmem>>, %arg15: memref<2x16x32xf32, #tpu.memory_space<vmem>>) attributes {dimension_semantics = [#tpu.dimension_semantics<parallel>, #tpu.dimension_semantics<arbitrary>], iteration_bounds = array<i64: 1, 1>, scalar_prefetch = 0 : i64, scratch_operands = 0 : i64, tpu.core_type = #tpu.core_type<tc>, window_params = [{transform_indices = @transform_0, window_bounds = array<i64: 2, 16, 32>}, {pipeline_mode = #tpu.pipeline_mode<synchronous>, transform_indices = @transform_1, window_bounds = array<i64: 1, 1, 32>}, {pipeline_mode = #tpu.pipeline_mode<synchronous>, transform_indices = @transform_2, window_bounds = array<i64: 1, 1, 32>}, {pipeline_mode = #tpu.pipeline_mode<synchronous>, transform_indices = @transform_3, window_bounds = array<i64: 1, 32, 96>}, {pipeline_mode = #tpu.pipeline_mode<synchronous>, transform_indices = @transform_4, window_bounds = array<i64: 1, 1, 96>}, {pipeline_mode = #tpu.pipeline_mode<synchronous>, transform_indices = @transform_5, window_bounds = array<i64: 1, 32, 32>}, {pipeline_mode = #tpu.pipeline_mode<synchronous>, transform_indices = @transform_6, window_bounds = array<i64: 1, 1, 32>}, {pipeline_mode = #tpu.pipeline_mode<synchronous>, transform_indices = @transform_7, window_bounds = array<i64: 1, 1, 32>}, {pipeline_mode = #tpu.pipeline_mode<synchronous>, transform_indices = @transform_8, window_bounds = array<i64: 1, 1, 32>}, {pipeline_mode = #tpu.pipeline_mode<synchronous>, transform_indices = @transform_9, window_bounds = array<i64: 1, 32, 128>}, {pipeline_mode = #tpu.pipeline_mode<synchronous>, transform_indices = @transform_10, window_bounds = array<i64: 1, 1, 128>}, {pipeline_mode = #tpu.pipeline_mode<synchronous>, transform_indices = @transform_11, window_bounds = array<i64: 1, 128, 32>}, {pipeline_mode = #tpu.pipeline_mode<synchronous>, transform_indices = @transform_12, window_bounds = array<i64: 1, 1, 32>}, {transform_indices = @transform_13, window_bounds = array<i64: 2, 16, 32>}]} {
    %c0_i32 = arith.constant 0 : i32
    %0 = arith.cmpi eq, %arg1, %c0_i32 : i32
    %1 = arith.extui %0 : i1 to i32
    %c0_i32_0 = arith.constant 0 : i32
    %2 = arith.cmpi ne, %1, %c0_i32_0 : i32
    scf.if %2 {
      %c0_83 = arith.constant 0 : index
      %c0_84 = arith.constant 0 : index
      %c0_85 = arith.constant 0 : index
      %204 = vector.load %arg2[%c0_83, %c0_84, %c0_85] : memref<2x16x32xf32, #tpu.memory_space<vmem>>, vector<2x16x32xf32>
      %c0_86 = arith.constant 0 : index
      %c0_87 = arith.constant 0 : index
      %c0_88 = arith.constant 0 : index
      %205 = vector.load %arg15[%c0_86, %c0_87, %c0_88] : memref<2x16x32xf32, #tpu.memory_space<vmem>>, vector<2x16x32xf32>
      tpu.vector_store %arg15[%c0_86, %c0_87, %c0_88], %204 {strides = array<i32>} : memref<2x16x32xf32, #tpu.memory_space<vmem>>, vector<2x16x32xf32>,
    } else {
    }
    %c0 = arith.constant 0 : index
    %c0_1 = arith.constant 0 : index
    %c0_2 = arith.constant 0 : index
    %3 = vector.load %arg15[%c0, %c0_1, %c0_2] : memref<2x16x32xf32, #tpu.memory_space<vmem>>, vector<2x16x32xf32>
    %4 = vector.shape_cast %3 : vector<2x16x32xf32> to vector<32x32xf32>
    %cst = arith.constant dense<0.000000e+00> : vector<32xf32>
    %5 = vector.multi_reduction <add>, %4, %cst [1] : vector<32x32xf32> to vector<32xf32>
    %6 = vector.shape_cast %5 : vector<32xf32> to vector<32x1xf32>
    %cst_3 = arith.constant 3.200000e+01 : f32
    %7 = vector.broadcast %cst_3 : f32 to vector<32x1xf32>
    %8 = arith.divf %6, %7 : vector<32x1xf32>
    %9 = vector.broadcast %8 : vector<32x1xf32> to vector<32x32xf32>
    %10 = arith.subf %4, %9 : vector<32x32xf32>
    %11 = arith.mulf %10, %10 : vector<32x32xf32>
    %cst_4 = arith.constant dense<0.000000e+00> : vector<32xf32>
    %12 = vector.multi_reduction <add>, %11, %cst_4 [1] : vector<32x32xf32> to vector<32xf32>
    %13 = vector.shape_cast %12 : vector<32xf32> to vector<32x1xf32>
    %cst_5 = arith.constant 3.200000e+01 : f32
    %14 = vector.broadcast %cst_5 : f32 to vector<32x1xf32>
    %15 = arith.divf %13, %14 : vector<32x1xf32>
    %16 = vector.broadcast %8 : vector<32x1xf32> to vector<32x32xf32>
    %17 = arith.subf %4, %16 : vector<32x32xf32>
    %cst_6 = arith.constant 9.99999974E-6 : f32
    %18 = vector.broadcast %cst_6 : f32 to vector<32x1xf32>
    %19 = arith.addf %15, %18 : vector<32x1xf32>
    %20 = math.rsqrt %19 : vector<32x1xf32>
    %21 = vector.broadcast %20 : vector<32x1xf32> to vector<32x32xf32>
    %22 = arith.mulf %17, %21 : vector<32x32xf32>
    %c0_7 = arith.constant 0 : index
    %c0_8 = arith.constant 0 : index
    %c0_9 = arith.constant 0 : index
    %23 = vector.load %arg3[%c0_7, %c0_8, %c0_9] : memref<1x1x32xf32, #tpu.memory_space<vmem>>, vector<1x1x32xf32>
    %24 = vector.shape_cast %23 : vector<1x1x32xf32> to vector<1x32xf32>
    %25 = vector.broadcast %24 : vector<1x32xf32> to vector<32x32xf32>
    %26 = arith.mulf %22, %25 : vector<32x32xf32>
    %c0_10 = arith.constant 0 : index
    %c0_11 = arith.constant 0 : index
    %c0_12 = arith.constant 0 : index
    %27 = vector.load %arg4[%c0_10, %c0_11, %c0_12] : memref<1x1x32xf32, #tpu.memory_space<vmem>>, vector<1x1x32xf32>
    %28 = vector.shape_cast %27 : vector<1x1x32xf32> to vector<1x32xf32>
    %29 = vector.broadcast %28 : vector<1x32xf32> to vector<32x32xf32>
    %30 = arith.addf %26, %29 : vector<32x32xf32>
    %31 = arith.truncf %30 : vector<32x32xf32> to vector<32x32xbf16>
    %c0_13 = arith.constant 0 : index
    %c0_14 = arith.constant 0 : index
    %c0_15 = arith.constant 0 : index
    %32 = vector.load %arg5[%c0_13, %c0_14, %c0_15] : memref<1x32x96xbf16, #tpu.memory_space<vmem>>, vector<1x32x96xbf16>
    %33 = vector.shape_cast %32 : vector<1x32x96xbf16> to vector<32x96xbf16>
    %cst_16 = arith.constant dense<0.000000e+00> : vector<32x96xf32>
    %34 = tpu.matmul %31, %33, %cst_16 {dimension_numbers = #tpu.dot_dimension_numbers<[1], [0], [0], [1], [0, 0, 1, 1], [], []>} : vector<32x32xbf16>, vector<32x96xbf16>, vector<32x96xf32> -> vector<32x96xf32>
    %c0_17 = arith.constant 0 : index
    %c0_18 = arith.constant 0 : index
    %c0_19 = arith.constant 0 : index
    %35 = vector.load %arg6[%c0_17, %c0_18, %c0_19] : memref<1x1x96xf32, #tpu.memory_space<vmem>>, vector<1x1x96xf32>
    %36 = vector.shape_cast %35 : vector<1x1x96xf32> to vector<1x96xf32>
    %37 = vector.broadcast %36 : vector<1x96xf32> to vector<32x96xf32>
    %38 = arith.addf %34, %37 : vector<32x96xf32>
    %39 = vector.extract_strided_slice %38 {offsets = [0, 0], sizes = [32, 32], strides = [1, 1]} : vector<32x96xf32> to vector<32x32xf32>
    %40 = vector.shape_cast %39 : vector<32x32xf32> to vector<2x16x32xf32>
    %41 = vector.extract_strided_slice %38 {offsets = [0, 32], sizes = [32, 32], strides = [1, 1]} : vector<32x96xf32> to vector<32x32xf32>
    %42 = vector.shape_cast %41 : vector<32x32xf32> to vector<2x16x32xf32>
    %43 = vector.extract_strided_slice %38 {offsets = [0, 64], sizes = [32, 32], strides = [1, 1]} : vector<32x96xf32> to vector<32x32xf32>
    %44 = vector.shape_cast %43 : vector<32x32xf32> to vector<2x16x32xf32>
    %cst_20 = arith.constant 0.000000e+00 : f32
    %45 = vector.broadcast %cst_20 : f32 to vector<32x32xf32>
    %46 = vector.extract_strided_slice %40 {offsets = [0, 0, 0], sizes = [2, 16, 8], strides = [1, 1, 1]} : vector<2x16x32xf32> to vector<2x16x8xf32>
    %47 = arith.truncf %46 : vector<2x16x8xf32> to vector<2x16x8xbf16>
    %48 = vector.extract_strided_slice %42 {offsets = [0, 0, 0], sizes = [2, 16, 8], strides = [1, 1, 1]} : vector<2x16x32xf32> to vector<2x16x8xf32>
    %49 = arith.truncf %48 : vector<2x16x8xf32> to vector<2x16x8xbf16>
    %50 = vector.extract_strided_slice %44 {offsets = [0, 0, 0], sizes = [2, 16, 8], strides = [1, 1, 1]} : vector<2x16x32xf32> to vector<2x16x8xf32>
    %51 = arith.truncf %50 : vector<2x16x8xf32> to vector<2x16x8xbf16>
    "tpu.trace_start"() <{level = 10 : i32, message = "bqd,bkd->bqk"}> : () -> ()
    %cst_21 = arith.constant dense<0.000000e+00> : vector<2x16x16xf32>
    %52 = tpu.matmul %47, %49, %cst_21 {dimension_numbers = #tpu.dot_dimension_numbers<[2], [2], [1], [1], [0, 0, 0, 1, 1, 1], [0], [0]>} : vector<2x16x8xbf16>, vector<2x16x8xbf16>, vector<2x16x16xf32> -> vector<2x16x16xf32>
    "tpu.trace_stop"() : () -> ()
    %cst_22 = arith.constant dense<0xFF800000> : vector<2x16xf32>
    %53 = vector.multi_reduction <maximumf>, %52, %cst_22 [2] : vector<2x16x16xf32> to vector<2x16xf32>
    %54 = vector.shape_cast %53 : vector<2x16xf32> to vector<2x16x1xf32>
    %55 = vector.broadcast %54 : vector<2x16x1xf32> to vector<2x16x16xf32>
    %56 = arith.subf %52, %55 : vector<2x16x16xf32>
    %57 = math.exp %56 : vector<2x16x16xf32>
    %cst_23 = arith.constant dense<0.000000e+00> : vector<2x16xf32>
    %58 = vector.multi_reduction <add>, %57, %cst_23 [2] : vector<2x16x16xf32> to vector<2x16xf32>
    %59 = vector.shape_cast %58 : vector<2x16xf32> to vector<2x16x1xf32>
    %60 = tpu.reciprocal %59 {approx = true} : vector<2x16x1xf32> -> vector<2x16x1xf32>
    %61 = vector.broadcast %60 : vector<2x16x1xf32> to vector<2x16x16xf32>
    %62 = arith.mulf %57, %61 : vector<2x16x16xf32>
    %63 = arith.truncf %62 : vector<2x16x16xf32> to vector<2x16x16xbf16>
    "tpu.trace_start"() <{level = 10 : i32, message = "bqk,bkd->bqd"}> : () -> ()
    %cst_24 = arith.constant dense<0.000000e+00> : vector<2x16x8xf32>
    %64 = tpu.matmul %63, %51, %cst_24 {dimension_numbers = #tpu.dot_dimension_numbers<[2], [1], [1], [2], [0, 0, 0, 1, 1, 2], [0], [0]>} : vector<2x16x16xbf16>, vector<2x16x8xbf16>, vector<2x16x8xf32> -> vector<2x16x8xf32>
    "tpu.trace_stop"() : () -> ()
    %65 = vector.shape_cast %64 : vector<2x16x8xf32> to vector<32x8xf32>
    %66 = arith.truncf %65 : vector<32x8xf32> to vector<32x8xbf16>
    %c0_25 = arith.constant 0 : index
    %c0_26 = arith.constant 0 : index
    %c0_27 = arith.constant 0 : index
    %67 = vector.load %arg7[%c0_25, %c0_26, %c0_27] : memref<1x32x32xbf16, #tpu.memory_space<vmem>>, vector<1x8x32xbf16>
    %68 = vector.shape_cast %67 : vector<1x8x32xbf16> to vector<8x32xbf16>
    %cst_28 = arith.constant dense<0.000000e+00> : vector<32x32xf32>
    %69 = tpu.matmul %66, %68, %cst_28 {dimension_numbers = #tpu.dot_dimension_numbers<[1], [0], [0], [1], [0, 0, 1, 1], [], []>} : vector<32x8xbf16>, vector<8x32xbf16>, vector<32x32xf32> -> vector<32x32xf32>
    %70 = arith.addf %45, %69 : vector<32x32xf32>
    %71 = vector.extract_strided_slice %40 {offsets = [0, 0, 8], sizes = [2, 16, 8], strides = [1, 1, 1]} : vector<2x16x32xf32> to vector<2x16x8xf32>
    %72 = arith.truncf %71 : vector<2x16x8xf32> to vector<2x16x8xbf16>
    %73 = vector.extract_strided_slice %42 {offsets = [0, 0, 8], sizes = [2, 16, 8], strides = [1, 1, 1]} : vector<2x16x32xf32> to vector<2x16x8xf32>
    %74 = arith.truncf %73 : vector<2x16x8xf32> to vector<2x16x8xbf16>
    %75 = vector.extract_strided_slice %44 {offsets = [0, 0, 8], sizes = [2, 16, 8], strides = [1, 1, 1]} : vector<2x16x32xf32> to vector<2x16x8xf32>
    %76 = arith.truncf %75 : vector<2x16x8xf32> to vector<2x16x8xbf16>
    "tpu.trace_start"() <{level = 10 : i32, message = "bqd,bkd->bqk"}> : () -> ()
    %cst_29 = arith.constant dense<0.000000e+00> : vector<2x16x16xf32>
    %77 = tpu.matmul %72, %74, %cst_29 {dimension_numbers = #tpu.dot_dimension_numbers<[2], [2], [1], [1], [0, 0, 0, 1, 1, 1], [0], [0]>} : vector<2x16x8xbf16>, vector<2x16x8xbf16>, vector<2x16x16xf32> -> vector<2x16x16xf32>
    "tpu.trace_stop"() : () -> ()
    %cst_30 = arith.constant dense<0xFF800000> : vector<2x16xf32>
    %78 = vector.multi_reduction <maximumf>, %77, %cst_30 [2] : vector<2x16x16xf32> to vector<2x16xf32>
    %79 = vector.shape_cast %78 : vector<2x16xf32> to vector<2x16x1xf32>
    %80 = vector.broadcast %79 : vector<2x16x1xf32> to vector<2x16x16xf32>
    %81 = arith.subf %77, %80 : vector<2x16x16xf32>
    %82 = math.exp %81 : vector<2x16x16xf32>
    %cst_31 = arith.constant dense<0.000000e+00> : vector<2x16xf32>
    %83 = vector.multi_reduction <add>, %82, %cst_31 [2] : vector<2x16x16xf32> to vector<2x16xf32>
    %84 = vector.shape_cast %83 : vector<2x16xf32> to vector<2x16x1xf32>
    %85 = tpu.reciprocal %84 {approx = true} : vector<2x16x1xf32> -> vector<2x16x1xf32>
    %86 = vector.broadcast %85 : vector<2x16x1xf32> to vector<2x16x16xf32>
    %87 = arith.mulf %82, %86 : vector<2x16x16xf32>
    %88 = arith.truncf %87 : vector<2x16x16xf32> to vector<2x16x16xbf16>
    "tpu.trace_start"() <{level = 10 : i32, message = "bqk,bkd->bqd"}> : () -> ()
    %cst_32 = arith.constant dense<0.000000e+00> : vector<2x16x8xf32>
    %89 = tpu.matmul %88, %76, %cst_32 {dimension_numbers = #tpu.dot_dimension_numbers<[2], [1], [1], [2], [0, 0, 0, 1, 1, 2], [0], [0]>} : vector<2x16x16xbf16>, vector<2x16x8xbf16>, vector<2x16x8xf32> -> vector<2x16x8xf32>
    "tpu.trace_stop"() : () -> ()
    %90 = vector.shape_cast %89 : vector<2x16x8xf32> to vector<32x8xf32>
    %91 = arith.truncf %90 : vector<32x8xf32> to vector<32x8xbf16>
    %c0_33 = arith.constant 0 : index
    %c8 = arith.constant 8 : index
    %c0_34 = arith.constant 0 : index
    %92 = vector.load %arg7[%c0_33, %c8, %c0_34] : memref<1x32x32xbf16, #tpu.memory_space<vmem>>, vector<1x8x32xbf16>
    %93 = vector.shape_cast %92 : vector<1x8x32xbf16> to vector<8x32xbf16>
    %cst_35 = arith.constant dense<0.000000e+00> : vector<32x32xf32>
    %94 = tpu.matmul %91, %93, %cst_35 {dimension_numbers = #tpu.dot_dimension_numbers<[1], [0], [0], [1], [0, 0, 1, 1], [], []>} : vector<32x8xbf16>, vector<8x32xbf16>, vector<32x32xf32> -> vector<32x32xf32>
    %95 = arith.addf %70, %94 : vector<32x32xf32>
    %96 = vector.extract_strided_slice %40 {offsets = [0, 0, 16], sizes = [2, 16, 8], strides = [1, 1, 1]} : vector<2x16x32xf32> to vector<2x16x8xf32>
    %97 = arith.truncf %96 : vector<2x16x8xf32> to vector<2x16x8xbf16>
    %98 = vector.extract_strided_slice %42 {offsets = [0, 0, 16], sizes = [2, 16, 8], strides = [1, 1, 1]} : vector<2x16x32xf32> to vector<2x16x8xf32>
    %99 = arith.truncf %98 : vector<2x16x8xf32> to vector<2x16x8xbf16>
    %100 = vector.extract_strided_slice %44 {offsets = [0, 0, 16], sizes = [2, 16, 8], strides = [1, 1, 1]} : vector<2x16x32xf32> to vector<2x16x8xf32>
    %101 = arith.truncf %100 : vector<2x16x8xf32> to vector<2x16x8xbf16>
    "tpu.trace_start"() <{level = 10 : i32, message = "bqd,bkd->bqk"}> : () -> ()
    %cst_36 = arith.constant dense<0.000000e+00> : vector<2x16x16xf32>
    %102 = tpu.matmul %97, %99, %cst_36 {dimension_numbers = #tpu.dot_dimension_numbers<[2], [2], [1], [1], [0, 0, 0, 1, 1, 1], [0], [0]>} : vector<2x16x8xbf16>, vector<2x16x8xbf16>, vector<2x16x16xf32> -> vector<2x16x16xf32>
    "tpu.trace_stop"() : () -> ()
    %cst_37 = arith.constant dense<0xFF800000> : vector<2x16xf32>
    %103 = vector.multi_reduction <maximumf>, %102, %cst_37 [2] : vector<2x16x16xf32> to vector<2x16xf32>
    %104 = vector.shape_cast %103 : vector<2x16xf32> to vector<2x16x1xf32>
    %105 = vector.broadcast %104 : vector<2x16x1xf32> to vector<2x16x16xf32>
    %106 = arith.subf %102, %105 : vector<2x16x16xf32>
    %107 = math.exp %106 : vector<2x16x16xf32>
    %cst_38 = arith.constant dense<0.000000e+00> : vector<2x16xf32>
    %108 = vector.multi_reduction <add>, %107, %cst_38 [2] : vector<2x16x16xf32> to vector<2x16xf32>
    %109 = vector.shape_cast %108 : vector<2x16xf32> to vector<2x16x1xf32>
    %110 = tpu.reciprocal %109 {approx = true} : vector<2x16x1xf32> -> vector<2x16x1xf32>
    %111 = vector.broadcast %110 : vector<2x16x1xf32> to vector<2x16x16xf32>
    %112 = arith.mulf %107, %111 : vector<2x16x16xf32>
    %113 = arith.truncf %112 : vector<2x16x16xf32> to vector<2x16x16xbf16>
    "tpu.trace_start"() <{level = 10 : i32, message = "bqk,bkd->bqd"}> : () -> ()
    %cst_39 = arith.constant dense<0.000000e+00> : vector<2x16x8xf32>
    %114 = tpu.matmul %113, %101, %cst_39 {dimension_numbers = #tpu.dot_dimension_numbers<[2], [1], [1], [2], [0, 0, 0, 1, 1, 2], [0], [0]>} : vector<2x16x16xbf16>, vector<2x16x8xbf16>, vector<2x16x8xf32> -> vector<2x16x8xf32>
    "tpu.trace_stop"() : () -> ()
    %115 = vector.shape_cast %114 : vector<2x16x8xf32> to vector<32x8xf32>
    %116 = arith.truncf %115 : vector<32x8xf32> to vector<32x8xbf16>
    %c0_40 = arith.constant 0 : index
    %c16 = arith.constant 16 : index
    %c0_41 = arith.constant 0 : index
    %117 = vector.load %arg7[%c0_40, %c16, %c0_41] : memref<1x32x32xbf16, #tpu.memory_space<vmem>>, vector<1x8x32xbf16>
    %118 = vector.shape_cast %117 : vector<1x8x32xbf16> to vector<8x32xbf16>
    %cst_42 = arith.constant dense<0.000000e+00> : vector<32x32xf32>
    %119 = tpu.matmul %116, %118, %cst_42 {dimension_numbers = #tpu.dot_dimension_numbers<[1], [0], [0], [1], [0, 0, 1, 1], [], []>} : vector<32x8xbf16>, vector<8x32xbf16>, vector<32x32xf32> -> vector<32x32xf32>
    %120 = arith.addf %95, %119 : vector<32x32xf32>
    %121 = vector.extract_strided_slice %40 {offsets = [0, 0, 24], sizes = [2, 16, 8], strides = [1, 1, 1]} : vector<2x16x32xf32> to vector<2x16x8xf32>
    %122 = arith.truncf %121 : vector<2x16x8xf32> to vector<2x16x8xbf16>
    %123 = vector.extract_strided_slice %42 {offsets = [0, 0, 24], sizes = [2, 16, 8], strides = [1, 1, 1]} : vector<2x16x32xf32> to vector<2x16x8xf32>
    %124 = arith.truncf %123 : vector<2x16x8xf32> to vector<2x16x8xbf16>
    %125 = vector.extract_strided_slice %44 {offsets = [0, 0, 24], sizes = [2, 16, 8], strides = [1, 1, 1]} : vector<2x16x32xf32> to vector<2x16x8xf32>
    %126 = arith.truncf %125 : vector<2x16x8xf32> to vector<2x16x8xbf16>
    "tpu.trace_start"() <{level = 10 : i32, message = "bqd,bkd->bqk"}> : () -> ()
    %cst_43 = arith.constant dense<0.000000e+00> : vector<2x16x16xf32>
    %127 = tpu.matmul %122, %124, %cst_43 {dimension_numbers = #tpu.dot_dimension_numbers<[2], [2], [1], [1], [0, 0, 0, 1, 1, 1], [0], [0]>} : vector<2x16x8xbf16>, vector<2x16x8xbf16>, vector<2x16x16xf32> -> vector<2x16x16xf32>
    "tpu.trace_stop"() : () -> ()
    %cst_44 = arith.constant dense<0xFF800000> : vector<2x16xf32>
    %128 = vector.multi_reduction <maximumf>, %127, %cst_44 [2] : vector<2x16x16xf32> to vector<2x16xf32>
    %129 = vector.shape_cast %128 : vector<2x16xf32> to vector<2x16x1xf32>
    %130 = vector.broadcast %129 : vector<2x16x1xf32> to vector<2x16x16xf32>
    %131 = arith.subf %127, %130 : vector<2x16x16xf32>
    %132 = math.exp %131 : vector<2x16x16xf32>
    %cst_45 = arith.constant dense<0.000000e+00> : vector<2x16xf32>
    %133 = vector.multi_reduction <add>, %132, %cst_45 [2] : vector<2x16x16xf32> to vector<2x16xf32>
    %134 = vector.shape_cast %133 : vector<2x16xf32> to vector<2x16x1xf32>
    %135 = tpu.reciprocal %134 {approx = true} : vector<2x16x1xf32> -> vector<2x16x1xf32>
    %136 = vector.broadcast %135 : vector<2x16x1xf32> to vector<2x16x16xf32>
    %137 = arith.mulf %132, %136 : vector<2x16x16xf32>
    %138 = arith.truncf %137 : vector<2x16x16xf32> to vector<2x16x16xbf16>
    "tpu.trace_start"() <{level = 10 : i32, message = "bqk,bkd->bqd"}> : () -> ()
    %cst_46 = arith.constant dense<0.000000e+00> : vector<2x16x8xf32>
    %139 = tpu.matmul %138, %126, %cst_46 {dimension_numbers = #tpu.dot_dimension_numbers<[2], [1], [1], [2], [0, 0, 0, 1, 1, 2], [0], [0]>} : vector<2x16x16xbf16>, vector<2x16x8xbf16>, vector<2x16x8xf32> -> vector<2x16x8xf32>
    "tpu.trace_stop"() : () -> ()
    %140 = vector.shape_cast %139 : vector<2x16x8xf32> to vector<32x8xf32>
    %141 = arith.truncf %140 : vector<32x8xf32> to vector<32x8xbf16>
    %c0_47 = arith.constant 0 : index
    %c24 = arith.constant 24 : index
    %c0_48 = arith.constant 0 : index
    %142 = vector.load %arg7[%c0_47, %c24, %c0_48] : memref<1x32x32xbf16, #tpu.memory_space<vmem>>, vector<1x8x32xbf16>
    %143 = vector.shape_cast %142 : vector<1x8x32xbf16> to vector<8x32xbf16>
    %cst_49 = arith.constant dense<0.000000e+00> : vector<32x32xf32>
    %144 = tpu.matmul %141, %143, %cst_49 {dimension_numbers = #tpu.dot_dimension_numbers<[1], [0], [0], [1], [0, 0, 1, 1], [], []>} : vector<32x8xbf16>, vector<8x32xbf16>, vector<32x32xf32> -> vector<32x32xf32>
    %145 = arith.addf %120, %144 : vector<32x32xf32>
    %146 = arith.addf %4, %145 : vector<32x32xf32>
    %c0_50 = arith.constant 0 : index
    %c0_51 = arith.constant 0 : index
    %c0_52 = arith.constant 0 : index
    %147 = vector.load %arg8[%c0_50, %c0_51, %c0_52] : memref<1x1x32xf32, #tpu.memory_space<vmem>>, vector<1x1x32xf32>
    %148 = vector.shape_cast %147 : vector<1x1x32xf32> to vector<1x32xf32>
    %149 = vector.broadcast %148 : vector<1x32xf32> to vector<32x32xf32>
    %150 = arith.addf %146, %149 : vector<32x32xf32>
    %cst_53 = arith.constant dense<0.000000e+00> : vector<32xf32>
    %151 = vector.multi_reduction <add>, %150, %cst_53 [1] : vector<32x32xf32> to vector<32xf32>
    %152 = vector.shape_cast %151 : vector<32xf32> to vector<32x1xf32>
    %cst_54 = arith.constant 3.200000e+01 : f32
    %153 = vector.broadcast %cst_54 : f32 to vector<32x1xf32>
    %154 = arith.divf %152, %153 : vector<32x1xf32>
    %155 = vector.broadcast %154 : vector<32x1xf32> to vector<32x32xf32>
    %156 = arith.subf %150, %155 : vector<32x32xf32>
    %157 = arith.mulf %156, %156 : vector<32x32xf32>
    %cst_55 = arith.constant dense<0.000000e+00> : vector<32xf32>
    %158 = vector.multi_reduction <add>, %157, %cst_55 [1] : vector<32x32xf32> to vector<32xf32>
    %159 = vector.shape_cast %158 : vector<32xf32> to vector<32x1xf32>
    %cst_56 = arith.constant 3.200000e+01 : f32
    %160 = vector.broadcast %cst_56 : f32 to vector<32x1xf32>
    %161 = arith.divf %159, %160 : vector<32x1xf32>
    %162 = vector.broadcast %154 : vector<32x1xf32> to vector<32x32xf32>
    %163 = arith.subf %150, %162 : vector<32x32xf32>
    %cst_57 = arith.constant 9.99999974E-6 : f32
    %164 = vector.broadcast %cst_57 : f32 to vector<32x1xf32>
    %165 = arith.addf %161, %164 : vector<32x1xf32>
    %166 = math.rsqrt %165 : vector<32x1xf32>
    %167 = vector.broadcast %166 : vector<32x1xf32> to vector<32x32xf32>
    %168 = arith.mulf %163, %167 : vector<32x32xf32>
    %c0_58 = arith.constant 0 : index
    %c0_59 = arith.constant 0 : index
    %c0_60 = arith.constant 0 : index
    %169 = vector.load %arg9[%c0_58, %c0_59, %c0_60] : memref<1x1x32xf32, #tpu.memory_space<vmem>>, vector<1x1x32xf32>
    %170 = vector.shape_cast %169 : vector<1x1x32xf32> to vector<1x32xf32>
    %171 = vector.broadcast %170 : vector<1x32xf32> to vector<32x32xf32>
    %172 = arith.mulf %168, %171 : vector<32x32xf32>
    %c0_61 = arith.constant 0 : index
    %c0_62 = arith.constant 0 : index
    %c0_63 = arith.constant 0 : index
    %173 = vector.load %arg10[%c0_61, %c0_62, %c0_63] : memref<1x1x32xf32, #tpu.memory_space<vmem>>, vector<1x1x32xf32>
    %174 = vector.shape_cast %173 : vector<1x1x32xf32> to vector<1x32xf32>
    %175 = vector.broadcast %174 : vector<1x32xf32> to vector<32x32xf32>
    %176 = arith.addf %172, %175 : vector<32x32xf32>
    %177 = arith.truncf %176 : vector<32x32xf32> to vector<32x32xbf16>
    %c0_64 = arith.constant 0 : index
    %c0_65 = arith.constant 0 : index
    %c0_66 = arith.constant 0 : index
    %178 = vector.load %arg11[%c0_64, %c0_65, %c0_66] : memref<1x32x128xbf16, #tpu.memory_space<vmem>>, vector<1x32x128xbf16>
    %179 = vector.shape_cast %178 : vector<1x32x128xbf16> to vector<32x128xbf16>
    %cst_67 = arith.constant dense<0.000000e+00> : vector<32x128xf32>
    %180 = tpu.matmul %177, %179, %cst_67 {dimension_numbers = #tpu.dot_dimension_numbers<[1], [0], [0], [1], [0, 0, 1, 1], [], []>} : vector<32x32xbf16>, vector<32x128xbf16>, vector<32x128xf32> -> vector<32x128xf32>
    %c0_68 = arith.constant 0 : index
    %c0_69 = arith.constant 0 : index
    %c0_70 = arith.constant 0 : index
    %181 = vector.load %arg12[%c0_68, %c0_69, %c0_70] : memref<1x1x128xf32, #tpu.memory_space<vmem>>, vector<1x1x128xf32>
    %182 = vector.shape_cast %181 : vector<1x1x128xf32> to vector<1x128xf32>
    %183 = vector.broadcast %182 : vector<1x128xf32> to vector<32x128xf32>
    %184 = arith.addf %180, %183 : vector<32x128xf32>
    %185 = arith.truncf %184 : vector<32x128xf32> to vector<32x128xbf16>
    %cst_71 = arith.constant 1.703130e+00 : bf16
    %186 = vector.broadcast %cst_71 : bf16 to vector<32x128xbf16>
    %187 = arith.mulf %186, %185 : vector<32x128xbf16>
    %188 = arith.negf %187 : vector<32x128xbf16>
    %189 = math.exp %188 : vector<32x128xbf16>
    %cst_72 = arith.constant 1.000000e+00 : bf16
    %190 = vector.broadcast %cst_72 : bf16 to vector<32x128xbf16>
    %191 = arith.addf %190, %189 : vector<32x128xbf16>
    %192 = arith.divf %190, %191 : vector<32x128xbf16>
    %193 = arith.mulf %185, %192 : vector<32x128xbf16>
    %c0_73 = arith.constant 0 : index
    %c0_74 = arith.constant 0 : index
    %c0_75 = arith.constant 0 : index
    %194 = vector.load %arg13[%c0_73, %c0_74, %c0_75] : memref<1x128x32xbf16, #tpu.memory_space<vmem>>, vector<1x128x32xbf16>
    %195 = vector.shape_cast %194 : vector<1x128x32xbf16> to vector<128x32xbf16>
    %cst_76 = arith.constant dense<0.000000e+00> : vector<32x32xf32>
    %196 = tpu.matmul %193, %195, %cst_76 {dimension_numbers = #tpu.dot_dimension_numbers<[1], [0], [0], [1], [0, 0, 1, 1], [], []>} : vector<32x128xbf16>, vector<128x32xbf16>, vector<32x32xf32> -> vector<32x32xf32>
    %c0_77 = arith.constant 0 : index
    %c0_78 = arith.constant 0 : index
    %c0_79 = arith.constant 0 : index
    %197 = vector.load %arg14[%c0_77, %c0_78, %c0_79] : memref<1x1x32xf32, #tpu.memory_space<vmem>>, vector<1x1x32xf32>
    %198 = vector.shape_cast %197 : vector<1x1x32xf32> to vector<1x32xf32>
    %199 = vector.broadcast %198 : vector<1x32xf32> to vector<32x32xf32>
    %200 = arith.addf %196, %199 : vector<32x32xf32>
    %201 = arith.addf %150, %200 : vector<32x32xf32>
    %202 = vector.shape_cast %201 : vector<32x32xf32> to vector<2x16x32xf32>
    %c0_80 = arith.constant 0 : index
    %c0_81 = arith.constant 0 : index
    %c0_82 = arith.constant 0 : index
    %203 = vector.load %arg15[%c0_80, %c0_81, %c0_82] : memref<2x16x32xf32, #tpu.memory_space<vmem>>, vector<2x16x32xf32>
    tpu.vector_store %arg15[%c0_80, %c0_81, %c0_82], %202 {strides = array<i32>} : memref<2x16x32xf32, #tpu.memory_space<vmem>>, vector<2x16x32xf32>,
    return
  }
  func.func @transform_0(%arg0: i32, %arg1: i32) -> (i32, i32, i32) {
    %c0_i32 = arith.constant 0 : i32
    %c0_i32_0 = arith.constant 0 : i32
    %c0_i32_1 = arith.constant 0 : i32
    return %arg0, %c0_i32, %c0_i32_0 : i32, i32, i32
  }
  func.func @transform_1(%arg0: i32, %arg1: i32) -> (i32, i32, i32) {
    %c0_i32 = arith.constant 0 : i32
    %c0_i32_0 = arith.constant 0 : i32
    %c0_i32_1 = arith.constant 0 : i32
    return %arg1, %c0_i32, %c0_i32_0 : i32, i32, i32
  }
  func.func @transform_2(%arg0: i32, %arg1: i32) -> (i32, i32, i32) {
    %c0_i32 = arith.constant 0 : i32
    %c0_i32_0 = arith.constant 0 : i32
    %c0_i32_1 = arith.constant 0 : i32
    return %arg1, %c0_i32, %c0_i32_0 : i32, i32, i32
  }
  func.func @transform_3(%arg0: i32, %arg1: i32) -> (i32, i32, i32) {
    %c0_i32 = arith.constant 0 : i32
    %c0_i32_0 = arith.constant 0 : i32
    %c0_i32_1 = arith.constant 0 : i32
    return %arg1, %c0_i32, %c0_i32_0 : i32, i32, i32
  }
  func.func @transform_4(%arg0: i32, %arg1: i32) -> (i32, i32, i32) {
    %c0_i32 = arith.constant 0 : i32
    %c0_i32_0 = arith.constant 0 : i32
    %c0_i32_1 = arith.constant 0 : i32
    return %arg1, %c0_i32, %c0_i32_0 : i32, i32, i32
  }
  func.func @transform_5(%arg0: i32, %arg1: i32) -> (i32, i32, i32) {
    %c0_i32 = arith.constant 0 : i32
    %c0_i32_0 = arith.constant 0 : i32
    %c0_i32_1 = arith.constant 0 : i32
    return %arg1, %c0_i32, %c0_i32_0 : i32, i32, i32
  }
  func.func @transform_6(%arg0: i32, %arg1: i32) -> (i32, i32, i32) {
    %c0_i32 = arith.constant 0 : i32
    %c0_i32_0 = arith.constant 0 : i32
    %c0_i32_1 = arith.constant 0 : i32
    return %arg1, %c0_i32, %c0_i32_0 : i32, i32, i32
  }
  func.func @transform_7(%arg0: i32, %arg1: i32) -> (i32, i32, i32) {
    %c0_i32 = arith.constant 0 : i32
    %c0_i32_0 = arith.constant 0 : i32
    %c0_i32_1 = arith.constant 0 : i32
    return %arg1, %c0_i32, %c0_i32_0 : i32, i32, i32
  }
  func.func @transform_8(%arg0: i32, %arg1: i32) -> (i32, i32, i32) {
    %c0_i32 = arith.constant 0 : i32
    %c0_i32_0 = arith.constant 0 : i32
    %c0_i32_1 = arith.constant 0 : i32
    return %arg1, %c0_i32, %c0_i32_0 : i32, i32, i32
  }
  func.func @transform_9(%arg0: i32, %arg1: i32) -> (i32, i32, i32) {
    %c0_i32 = arith.constant 0 : i32
    %c0_i32_0 = arith.constant 0 : i32
    %c0_i32_1 = arith.constant 0 : i32
    return %arg1, %c0_i32, %c0_i32_0 : i32, i32, i32
  }
  func.func @transform_10(%arg0: i32, %arg1: i32) -> (i32, i32, i32) {
    %c0_i32 = arith.constant 0 : i32
    %c0_i32_0 = arith.constant 0 : i32
    %c0_i32_1 = arith.constant 0 : i32
    return %arg1, %c0_i32, %c0_i32_0 : i32, i32, i32
  }
  func.func @transform_11(%arg0: i32, %arg1: i32) -> (i32, i32, i32) {
    %c0_i32 = arith.constant 0 : i32
    %c0_i32_0 = arith.constant 0 : i32
    %c0_i32_1 = arith.constant 0 : i32
    return %arg1, %c0_i32, %c0_i32_0 : i32, i32, i32
  }
  func.func @transform_12(%arg0: i32, %arg1: i32) -> (i32, i32, i32) {
    %c0_i32 = arith.constant 0 : i32
    %c0_i32_0 = arith.constant 0 : i32
    %c0_i32_1 = arith.constant 0 : i32
    return %arg1, %c0_i32, %c0_i32_0 : i32, i32, i32
  }
  func.func @transform_13(%arg0: i32, %arg1: i32) -> (i32, i32, i32) {
    %c0_i32 = arith.constant 0 : i32
    %c0_i32_0 = arith.constant 0 : i32
    %c0_i32_1 = arith.constant 0 : i32
    return %arg0, %c0_i32, %c0_i32_0 : i32, i32, i32
  }
}

</mosaic_0001>

<bundles_post_ra>
// kernel: tpu_custom_call.1
= control target key start
LH: loop header
LB: loop body
LE: loop exit
PB: predicated region body
PF: predicated region fallthrough
CT: control target
= control target key end

     0   :  { %18 = vsyncpa [#allocation3], 0  ;;  %s3217_s0 = inlined_call_operand.hbm [shape: f32[2,16,32], index: 0, kind: input, shape index: {}]   ;;  %s3218_s1 = inlined_call_operand.hbm [shape: f32[1,1,32], index: 1, kind: input, shape index: {}]   ;;  %s3219_s2 = inlined_call_operand.hbm [shape: f32[1,1,32], index: 2, kind: input, shape index: {}]   ;;  %s3220_s3 = inlined_call_operand.hbm [shape: bf16[1,32,96], index: 3, kind: input, shape index: {}]   ;;  %s3221_s4 = inlined_call_operand.hbm [shape: f32[1,1,96], index: 4, kind: input, shape index: {}]   ;;  %s3222_s5 = inlined_call_operand.hbm [shape: bf16[1,32,32], index: 5, kind: input, shape index: {}]   ;;  %s3223_s6 = inlined_call_operand.hbm [shape: f32[1,1,32], index: 6, kind: input, shape index: {}]   ;;  %s3224_s7 = inlined_call_operand.hbm [shape: f32[1,1,32], index: 7, kind: input, shape index: {}]   ;;  %s3225_s8 = inlined_call_operand.hbm [shape: f32[1,1,32], index: 8, kind: input, shape index: {}]   ;;  %s3226_s9 = inlined_call_operand.hbm [shape: bf16[1,32,128], index: 9, kind: input, shape index: {}]   ;;  %s3227_s10 = inlined_call_operand.hbm [shape: f32[1,1,128], index: 10, kind: input, shape index: {}]   ;;  %s3228_s11 = inlined_call_operand.hbm [shape: bf16[1,128,32], index: 11, kind: input, shape index: {}]   ;;  %s3229_s12 = inlined_call_operand.hbm [shape: f32[1,1,32], index: 12, kind: input, shape index: {}]   ;;  %s3230_s13 = inlined_call_operand.hbm [shape: f32[2,16,32], index: 13, kind: output, shape index: {}]  }
   0x1   :  { %19 = vsyncpa [#allocation6], 0 }
   0x2   :  { %20 = vsyncpa [#allocation9], 0 }
   0x3   :  { %21 = vsyncpa [#allocation12], 0 }
   0x4   :  { %22 = vsyncpa [#allocation15], 0 }
   0x5   :  { %23 = vsyncpa [#allocation18], 0 }
   0x6   :  { %24 = vsyncpa [#allocation21], 0 }
   0x7   :  { %25 = vsyncpa [#allocation4], 0  ;;  %s2686_s25 = smov [#allocation5]   ;;  %s2687_s27 = smov [#allocation8]  }
   0x8   :  { %s44_s26 = sshll.u32 %s2686_s25, 4  ;;  %s63_s28 = sshll.u32 %s2687_s27, 4  ;;  %s45_s26 = int_to_ptr.vmem [resolvable:$true] %s44_s26  ;;  %s2786_s28 = int_to_ptr.vmem [resolvable:$true] %s63_s28 }
   0x9   :  { %s2362_s14 = scalar_lea.hbm %s3218_s1, 16 }
   0xa   :  { %p2363_p0 = scmp.ne.s32.totalorder %s3218_s1, %s2362_s14  ;;  %p2366_p1 = scmp.lt.u32.totalorder %s2362_s14, %s3218_s1 }
   0xc   :  { %p2368_p2 = pnand %p2366_p1, %p2363_p0 }
   0xe   :  { %2371 = shalt.err (!%p2368_p2)
}
   0xf   :  { %s2372_s19 = scalar_lea.vmem %s45_s26, 16  ;;  %s2376_s20 = scalar_lea.vmem %s45_s26, 32 }
  0x10   :  { %p2373_p3 = scmp.ne.s32.totalorder %s45_s26, %s2372_s19  ;;  %p2377_p4 = scmp.lt.s32.totalorder %s45_s26, %s45_s26 }
  0x11   :  { %p2378_p5 = scmp.lt.s32.totalorder %s2376_s20, %s2372_s19 }
  0x13   :  { %p2379_p6 = por %p2378_p5, %p2377_p4 }
  0x15   :  { %p2380_p7 = pnand %p2379_p6, %p2373_p3 }
  0x17   :  { %2383 = shalt.err (!%p2380_p7)
}
  0x18   :  { %47 = dma.hbm_to_vmem [thread:$0]  %s3218_s1, 16, %s45_s26, [#allocation6]  }
  0x19   :  { %s2384_s25 = scalar_lea.hbm %s3220_s3, 256 }
  0x1a   :  { %p2385_p8 = scmp.ne.s32.totalorder %s3220_s3, %s2384_s25  ;;  %p2388_p9 = scmp.lt.u32.totalorder %s2384_s25, %s3220_s3 }
  0x1c   :  { %p2390_p10 = pnand %p2388_p9, %p2385_p8 }
  0x1e   :  { %2393 = shalt.err (!%p2390_p10)
}
  0x1f   :  { %s2394_s15 = scalar_lea.vmem %s2786_s28, 256  ;;  %p2399_p12 = scmp.lt.s32.totalorder %s2786_s28, %s2786_s28 }
  0x20   :  { %p2395_p11 = scmp.ne.s32.totalorder %s2786_s28, %s2394_s15  ;;  %p2400_p13 = scmp.lt.s32.totalorder %s2394_s15, %s2394_s15 }
  0x22   :  { %p2401_p0 = por %p2400_p13, %p2399_p12 }
  0x24   :  { %p2402_p1 = pnand %p2401_p0, %p2395_p11 }
  0x26   :  { %2405 = shalt.err (!%p2402_p1)
}
  0x27   :  { %s2688_s1 = smov 64   ;;  %s2689_s26 = smov 4  }
  0x28   :  { %69 = dma.hbm_to_vmem [thread:$0]  %s3220_s3, 256, %s2786_s28, [#allocation9], %s2688_s1, %s2688_s1, %s2689_s26  }
  0x29   :  { %s2690_s18 = smov [#allocation11]   ;;  %s2691_s20 = smov [#allocation14]  }
  0x2a   :  { %s85_s19 = sshll.u32 %s2690_s18, 4  ;;  %s108_s21 = sshll.u32 %s2691_s20, 4  ;;  %s86_s19 = int_to_ptr.vmem [resolvable:$true] %s85_s19  ;;  %s109_s21 = int_to_ptr.vmem [resolvable:$true] %s108_s21 }
  0x2b   :  { %s2406_s24 = scalar_lea.hbm %s3222_s5, 256 }
  0x2c   :  { %p2407_p2 = scmp.ne.s32.totalorder %s3222_s5, %s2406_s24  ;;  %p2410_p3 = scmp.lt.u32.totalorder %s2406_s24, %s3222_s5 }
  0x2e   :  { %p2412_p4 = pnand %p2410_p3, %p2407_p2 }
  0x30   :  { %2415 = shalt.err (!%p2412_p4)
}
  0x31   :  { %s2416_s3 = scalar_lea.vmem %s86_s19, 256  ;;  %p2421_p6 = scmp.lt.s32.totalorder %s86_s19, %s86_s19 }
  0x32   :  { %p2417_p5 = scmp.ne.s32.totalorder %s86_s19, %s2416_s3  ;;  %p2422_p7 = scmp.lt.s32.totalorder %s2416_s3, %s2416_s3 }
  0x34   :  { %p2423_p8 = por %p2422_p7, %p2421_p6 }
  0x36   :  { %p2424_p9 = pnand %p2423_p8, %p2417_p5 }
  0x38   :  { %2427 = shalt.err (!%p2424_p9)
}
  0x39   :  { %91 = dma.hbm_to_vmem [thread:$0]  %s3222_s5, 256, %s86_s19, [#allocation12], %s2688_s1, %s2688_s1, %s2689_s26  }
  0x3a   :  { %s2428_s17 = scalar_lea.hbm %s3224_s7, 16 }
  0x3b   :  { %p2429_p10 = scmp.ne.s32.totalorder %s3224_s7, %s2428_s17  ;;  %p2432_p11 = scmp.lt.u32.totalorder %s2428_s17, %s3224_s7 }
  0x3d   :  { %p2434_p12 = pnand %p2432_p11, %p2429_p10 }
  0x3f   :  { %2437 = shalt.err (!%p2434_p12)
}
  0x40   :  { %s2438_s24 = scalar_lea.vmem %s109_s21, 16  ;;  %s2442_s25 = scalar_lea.vmem %s109_s21, 32 }
  0x41   :  { %p2439_p13 = scmp.ne.s32.totalorder %s109_s21, %s2438_s24  ;;  %p2443_p0 = scmp.lt.s32.totalorder %s109_s21, %s109_s21 }
  0x42   :  { %p2444_p1 = scmp.lt.s32.totalorder %s2442_s25, %s2438_s24 }
  0x44   :  { %p2445_p2 = por %p2444_p1, %p2443_p0 }
  0x46   :  { %p2446_p3 = pnand %p2445_p2, %p2439_p13 }
  0x48   :  { %2449 = shalt.err (!%p2446_p3)
}
  0x49   :  { %111 = dma.hbm_to_vmem [thread:$0]  %s3224_s7, 16, %s109_s21, [#allocation15]  }
  0x4a   :  { %s2692_s27 = smov [#allocation17]   ;;  %s2693_s30 = smov [#allocation20]  }
  0x4b   :  { %s127_s29 = sshll.u32 %s2692_s27, 4  ;;  %s149_s3 = sshll.u32 %s2693_s30, 4  ;;  %s128_s29 = int_to_ptr.vmem [resolvable:$true] %s127_s29  ;;  %s2847_s3 = int_to_ptr.vmem [resolvable:$true] %s149_s3 }
  0x4c   :  { %s2450_s15 = scalar_lea.hbm %s3226_s9, 256 }
  0x4d   :  { %p2451_p4 = scmp.ne.s32.totalorder %s3226_s9, %s2450_s15  ;;  %p2454_p5 = scmp.lt.u32.totalorder %s2450_s15, %s3226_s9 }
  0x4f   :  { %p2456_p6 = pnand %p2454_p5, %p2451_p4 }
  0x51   :  { %2459 = shalt.err (!%p2456_p6)
}
  0x52   :  { %s2460_s7 = scalar_lea.vmem %s128_s29, 256  ;;  %p2465_p8 = scmp.lt.s32.totalorder %s128_s29, %s128_s29 }
  0x53   :  { %p2461_p7 = scmp.ne.s32.totalorder %s128_s29, %s2460_s7  ;;  %p2466_p9 = scmp.lt.s32.totalorder %s2460_s7, %s2460_s7 }
  0x55   :  { %p2467_p10 = por %p2466_p9, %p2465_p8 }
  0x57   :  { %p2468_p11 = pnand %p2467_p10, %p2461_p7 }
  0x59   :  { %2471 = shalt.err (!%p2468_p11)
}
  0x5a   :  { %133 = dma.hbm_to_vmem [thread:$0]  %s3226_s9, 256, %s128_s29, [#allocation18], %s2688_s1, %s2688_s1, %s2689_s26  }
  0x5b   :  { %s2472_s25 = scalar_lea.hbm %s3228_s11, 1024 }
  0x5c   :  { %p2473_p12 = scmp.ne.s32.totalorder %s3228_s11, %s2472_s25  ;;  %p2476_p13 = scmp.lt.u32.totalorder %s2472_s25, %s3228_s11 }
  0x5e   :  { %p2478_p0 = pnand %p2476_p13, %p2473_p12 }
  0x60   :  { %2481 = shalt.err (!%p2478_p0)
}
  0x61   :  { %s2482_s28 = scalar_lea.vmem %s2847_s3, 1024  ;;  %p2487_p2 = scmp.lt.s32.totalorder %s2847_s3, %s2847_s3 }
  0x62   :  { %p2483_p1 = scmp.ne.s32.totalorder %s2847_s3, %s2482_s28  ;;  %p2488_p3 = scmp.lt.s32.totalorder %s2482_s28, %s2482_s28 }
  0x64   :  { %p2489_p4 = por %p2488_p3, %p2487_p2 }
  0x66   :  { %p2490_p5 = pnand %p2489_p4, %p2483_p1 }
  0x68   :  { %2493 = shalt.err (!%p2490_p5)
}
  0x69   :  { %155 = dma.hbm_to_vmem [thread:$0]  %s3228_s11, 1024, %s2847_s3, [#allocation21], %s2688_s1, %s2688_s1, %s2689_s26  }
  0x6a   :  { %s2694_s14 = smov [#allocation2]   ;;  %s2494_s18 = scalar_lea.hbm %s3217_s0, 512 }
  0x6b   :  { %s31_s15 = sshll.u32 %s2694_s14, 4  ;;  %p2495_p6 = scmp.ne.s32.totalorder %s3217_s0, %s2494_s18  ;;  %s32_s15 = int_to_ptr.vmem [resolvable:$true] %s31_s15 }
  0x6c   :  { %p2498_p7 = scmp.lt.u32.totalorder %s2494_s18, %s3217_s0 }
  0x6e   :  { %p2500_p8 = pnand %p2498_p7, %p2495_p6 }
  0x70   :  { %2503 = shalt.err (!%p2500_p8)
}
  0x71   :  { %s2504_s23 = scalar_lea.vmem %s32_s15, 512  ;;  %p2509_p10 = scmp.lt.s32.totalorder %s32_s15, %s32_s15 }
  0x72   :  { %p2505_p9 = scmp.ne.s32.totalorder %s32_s15, %s2504_s23  ;;  %p2510_p11 = scmp.lt.s32.totalorder %s2504_s23, %s2504_s23 }
  0x74   :  { %p2511_p12 = por %p2510_p11, %p2509_p10 }
  0x76   :  { %p2512_p13 = pnand %p2511_p12, %p2505_p9 }
  0x78   :  { %2515 = shalt.err (!%p2512_p13)
}
  0x79   :  { %s2695_s11 = smov 128   ;;  %s2696_s26 = smov 8  }
  0x7a   :  { %37 = dma.hbm_to_vmem [thread:$0]  %s3217_s0, 512, %s32_s15, [#allocation3], %s2695_s11, %s2695_s11, %s2696_s26  }
  0x7b   :  { %s2697_s25 = smov [#allocation7]   ;;  %s2698_s19 = smov [#allocation10]  }
  0x7c   :  { %s54_s5 = sshll.u32 %s2697_s25, 4  ;;  %s76_s27 = sshll.u32 %s2698_s19, 4  ;;  %s55_s5 = int_to_ptr.vmem [resolvable:$true] %s54_s5  ;;  %s77_s27 = int_to_ptr.vmem [resolvable:$true] %s76_s27 }
  0x7d   :  { %s2516_s9 = scalar_lea.hbm %s3219_s2, 16 }
  0x7e   :  { %p2517_p0 = scmp.ne.s32.totalorder %s3219_s2, %s2516_s9  ;;  %p2520_p1 = scmp.lt.u32.totalorder %s2516_s9, %s3219_s2 }
  0x80   :  { %p2522_p2 = pnand %p2520_p1, %p2517_p0 }
  0x82   :  { %2525 = shalt.err (!%p2522_p2)
}
  0x83   :  { %s2526_s0 = scalar_lea.vmem %s55_s5, 16  ;;  %s2530_s15 = scalar_lea.vmem %s55_s5, 32 }
  0x84   :  { %p2527_p3 = scmp.ne.s32.totalorder %s55_s5, %s2526_s0  ;;  %p2531_p4 = scmp.lt.s32.totalorder %s55_s5, %s55_s5 }
  0x85   :  { %p2532_p5 = scmp.lt.s32.totalorder %s2530_s15, %s2526_s0 }
  0x87   :  { %p2533_p6 = por %p2532_p5, %p2531_p4 }
  0x89   :  { %p2534_p7 = pnand %p2533_p6, %p2527_p3 }
  0x8b   :  { %2537 = shalt.err (!%p2534_p7)
}
  0x8c   :  { %57 = dma.hbm_to_vmem [thread:$0]  %s3219_s2, 16, %s55_s5, [#allocation6]  }
  0x8d   :  { %s2538_s22 = scalar_lea.hbm %s3221_s4, 16 }
  0x8e   :  { %p2539_p8 = scmp.ne.s32.totalorder %s3221_s4, %s2538_s22  ;;  %p2542_p9 = scmp.lt.u32.totalorder %s2538_s22, %s3221_s4 }
  0x90   :  { %p2544_p10 = pnand %p2542_p9, %p2539_p8 }
  0x92   :  { %2547 = shalt.err (!%p2544_p10)
}
  0x93   :  { %s2548_s19 = scalar_lea.vmem %s77_s27, 16  ;;  %s2552_s30 = scalar_lea.vmem %s77_s27, 32 }
  0x94   :  { %p2549_p11 = scmp.ne.s32.totalorder %s77_s27, %s2548_s19  ;;  %p2553_p12 = scmp.lt.s32.totalorder %s77_s27, %s77_s27 }
  0x95   :  { %p2554_p13 = scmp.lt.s32.totalorder %s2552_s30, %s2548_s19 }
  0x97   :  { %p2555_p0 = por %p2554_p13, %p2553_p12 }
  0x99   :  { %p2556_p1 = pnand %p2555_p0, %p2549_p11 }
  0x9b   :  { %2559 = shalt.err (!%p2556_p1)
}
  0x9c   :  { %79 = dma.hbm_to_vmem [thread:$0]  %s3221_s4, 16, %s77_s27, [#allocation9]  }
  0x9d   :  { %s2699_s28 = smov [#allocation13]   ;;  %s2700_s29 = smov [#allocation16]  }
  0x9e   :  { %s98_s9 = sshll.u32 %s2699_s28, 4  ;;  %s118_s14 = sshll.u32 %s2700_s29, 4  ;;  %s99_s9 = int_to_ptr.vmem [resolvable:$true] %s98_s9  ;;  %s119_s14 = int_to_ptr.vmem [resolvable:$true] %s118_s14 }
  0x9f   :  { %s2560_s0 = scalar_lea.hbm %s3223_s6, 16 }
  0xa0   :  { %p2561_p2 = scmp.ne.s32.totalorder %s3223_s6, %s2560_s0  ;;  %p2564_p3 = scmp.lt.u32.totalorder %s2560_s0, %s3223_s6 }
  0xa2   :  { %p2566_p4 = pnand %p2564_p3, %p2561_p2 }
  0xa4   :  { %2569 = shalt.err (!%p2566_p4)
}
  0xa5   :  { %s2570_s4 = scalar_lea.vmem %s99_s9, 16  ;;  %s2574_s27 = scalar_lea.vmem %s99_s9, 32 }
  0xa6   :  { %p2571_p5 = scmp.ne.s32.totalorder %s99_s9, %s2570_s4  ;;  %p2575_p6 = scmp.lt.s32.totalorder %s99_s9, %s99_s9 }
  0xa7   :  { %p2576_p7 = scmp.lt.s32.totalorder %s2574_s27, %s2570_s4 }
  0xa9   :  { %p2577_p8 = por %p2576_p7, %p2575_p6 }
  0xab   :  { %p2578_p9 = pnand %p2577_p8, %p2571_p5 }
  0xad   :  { %2581 = shalt.err (!%p2578_p9)
}
  0xae   :  { %101 = dma.hbm_to_vmem [thread:$0]  %s3223_s6, 16, %s99_s9, [#allocation12]  }
  0xaf   :  { %s2582_s24 = scalar_lea.hbm %s3225_s8, 16 }
  0xb0   :  { %p2583_p10 = scmp.ne.s32.totalorder %s3225_s8, %s2582_s24  ;;  %p2586_p11 = scmp.lt.u32.totalorder %s2582_s24, %s3225_s8 }
  0xb2   :  { %p2588_p12 = pnand %p2586_p11, %p2583_p10 }
  0xb4   :  { %2591 = shalt.err (!%p2588_p12)
}
  0xb5   :  { %s2592_s5 = scalar_lea.vmem %s119_s14, 16  ;;  %s2596_s28 = scalar_lea.vmem %s119_s14, 32 }
  0xb6   :  { %p2593_p13 = scmp.ne.s32.totalorder %s119_s14, %s2592_s5  ;;  %p2597_p0 = scmp.lt.s32.totalorder %s119_s14, %s119_s14 }
  0xb7   :  { %p2598_p1 = scmp.lt.s32.totalorder %s2596_s28, %s2592_s5 }
  0xb9   :  { %p2599_p2 = por %p2598_p1, %p2597_p0 }
  0xbb   :  { %p2600_p3 = pnand %p2599_p2, %p2593_p13 }
  0xbd   :  { %2603 = shalt.err (!%p2600_p3)
}
  0xbe   :  { %121 = dma.hbm_to_vmem [thread:$0]  %s3225_s8, 16, %s119_s14, [#allocation15]  }
  0xbf   :  { %s2701_s29 = smov [#allocation19]   ;;  %s2702_s17 = smov [#allocation22]  }
  0xc0   :  { %s140_s16 = sshll.u32 %s2701_s29, 4  ;;  %s162_s0 = sshll.u32 %s2702_s17, 4  ;;  %s141_s16 = int_to_ptr.vmem [resolvable:$true] %s140_s16  ;;  %s163_s0 = int_to_ptr.vmem [resolvable:$true] %s162_s0 }
  0xc1   :  { %s2604_s20 = scalar_lea.hbm %s3227_s10, 16 }
  0xc2   :  { %p2605_p4 = scmp.ne.s32.totalorder %s3227_s10, %s2604_s20  ;;  %p2608_p5 = scmp.lt.u32.totalorder %s2604_s20, %s3227_s10 }
  0xc4   :  { %p2610_p6 = pnand %p2608_p5, %p2605_p4 }
  0xc6   :  { %2613 = shalt.err (!%p2610_p6)
}
  0xc7   :  { %s2614_s8 = scalar_lea.vmem %s141_s16, 16  ;;  %s2618_s14 = scalar_lea.vmem %s141_s16, 32 }
  0xc8   :  { %p2615_p7 = scmp.ne.s32.totalorder %s141_s16, %s2614_s8  ;;  %p2619_p8 = scmp.lt.s32.totalorder %s141_s16, %s141_s16 }
  0xc9   :  { %p2620_p9 = scmp.lt.s32.totalorder %s2618_s14, %s2614_s8 }
  0xcb   :  { %p2621_p10 = por %p2620_p9, %p2619_p8 }
  0xcd   :  { %p2622_p11 = pnand %p2621_p10, %p2615_p7 }
  0xcf   :  { %2625 = shalt.err (!%p2622_p11)
}
  0xd0   :  { %143 = dma.hbm_to_vmem [thread:$0]  %s3227_s10, 16, %s141_s16, [#allocation18]  }
  0xd1   :  { %s2626_s25 = scalar_lea.hbm %s3229_s12, 16 }
  0xd2   :  { %p2627_p12 = scmp.ne.s32.totalorder %s3229_s12, %s2626_s25  ;;  %p2630_p13 = scmp.lt.u32.totalorder %s2626_s25, %s3229_s12 }
  0xd4   :  { %p2632_p0 = pnand %p2630_p13, %p2627_p12 }
  0xd6   :  { %2635 = shalt.err (!%p2632_p0)
}
  0xd7   :  { %s2636_s28 = scalar_lea.vmem %s163_s0, 16  ;;  %s2640_s6 = scalar_lea.vmem %s163_s0, 32 }
  0xd8   :  { %p2637_p1 = scmp.ne.s32.totalorder %s163_s0, %s2636_s28  ;;  %p2641_p2 = scmp.lt.s32.totalorder %s163_s0, %s163_s0 }
  0xd9   :  { %p2642_p3 = scmp.lt.s32.totalorder %s2640_s6, %s2636_s28 }
  0xdb   :  { %p2643_p4 = por %p2642_p3, %p2641_p2 }
  0xdd   :  { %p2644_p5 = pnand %p2643_p4, %p2637_p1 }
  0xdf   :  { %2647 = shalt.err (!%p2644_p5)
}
  0xe0   :  { %165 = dma.hbm_to_vmem [thread:$0]  %s3229_s12, 16, %s163_s0, [#allocation21]  }
  0xe1   :  { %2670 = dma.done.wait [#allocation3], 512  }
  0xe2   :  { %2671 = vsyncadd [#allocation3], 4294966784 }
  0xe3   :  { %2672 = dma.done.wait [#allocation6], 32  }
  0xe4   :  { %2673 = vsyncadd [#allocation6], 4294967264 }
  0xe5   :  { %2674 = dma.done.wait [#allocation9], 272  }
  0xe6   :  { %2675 = vsyncadd [#allocation9], 4294967024 }
  0xe7   :  { %2676 = dma.done.wait [#allocation12], 272  }
  0xe8   :  { %2677 = vsyncadd [#allocation12], 4294967024 }
  0xe9   :  { %2678 = dma.done.wait [#allocation15], 32  }
  0xea   :  { %2679 = vsyncadd [#allocation15], 4294967264 }
  0xeb   :  { %2680 = dma.done.wait [#allocation18], 272  }
  0xec   :  { %2681 = vsyncadd [#allocation18], 4294967024 }
  0xed   :  { %2682 = dma.done.wait [#allocation21], 1040  }
  0xee   :  { %2683 = vsyncadd [#allocation21], 4294966256  ;;  %vm216_vm0 = vcmask 261120   ;;  %v212_v0 = vld [vmem:[#allocation2] sm:$0xff]  ;;  %v214_v1 = vld [vmem:[#allocation2 + $0x10] sm:$0xff]  ;;  %vm2704_vm1 = vmmov 0  }
  0xef   :  { %v213_v2 = vld [vmem:[#allocation2 + $0x8] sm:$0xff]  ;;  %217 = vst.msk [vmem:[#allocation23] sm:$0xff] %vm216_vm0, %v212_v0  ;;  %219 = vst.msk [vmem:[#allocation23 + $0x10] sm:$0xff] %vm216_vm0, %v214_v1  ;;  %v215_v3 = vld [vmem:[#allocation2 + $0x18] sm:$0xff]  ;;  %s2705_s12 = smov 96   ;;  %vm386_vm2 = vcmask 64512  }
  0xf0   :  { %218 = vst.msk [vmem:[#allocation23 + $0x8] sm:$0xff] %vm216_vm0, %v213_v2  ;;  %220 = vst.msk [vmem:[#allocation23 + $0x18] sm:$0xff] %vm216_vm0, %v215_v3  ;;  %v2258_v32 = vld [vmem:[#allocation8] sm:$0xff]   ;;  %v2259_v33 = vld [vmem:[#allocation8 + $0x8] sm:$0xff]   ;;  %v2703_v2 = vmov 0.0   ;;  %vm484_vm3 = vcmask 130048  }
  0xf1   :  { %2056 = vmatprep.subr.bf16.mxu1 %v2258_v32  ;;  %v1944_v48 = vld [vmem:[#allocation5] ss:$0 sm:$0xff]  ;;  %v1945_v54 = vld [vmem:[#allocation7] ss:$0 sm:$0xff]  ;;  %2082 = vmatprep.subr.bf16.mxu0 %v2703_v2  ;;  %s2706_s29 = smov 88   ;;  %s2707_s16 = smov 120  }
  0xf2   :  { %2057 = vmatpush3.bf16.msra.mxu1 %v2258_v32  ;;  %2084 = vmatprep.mubr.msk.bf16.mxu0 %vm2704_vm1, %v2703_v2  ;;  %s2709_s17 = smov 112   ;;  %s2710_s0 = smov 56   ;;  %vm879_vm4 = vcmask 1043456  }
  0xf3   :  { %2058 = vmatprep.subr.bf16.mxu1 %v2259_v33  ;;  %s2711_s15 = smov 48   ;;  %s2712_s18 = smov 72  }
  0xf4   :  { %s2713_s20 = smov 104   ;;  %s2714_s7 = smov 40  }
  0xf5   :  { %s2715_s4 = smov [#allocation23]  }
  0xf6   :  { %v221_v4 = vld [vmem:[#allocation23] sm:$0xff]  ;;  %v223_v5 = vld [vmem:[#allocation23 + $0x10] sm:$0xff]  ;;  %2059 = vmatpush3.bf16.msra.mxu1 %v2259_v33  ;;  %s1926_s27 = sshll.u32 %s2715_s4, 4  ;;  %s1927_s27 = int_to_ptr.vmem [resolvable:$true] %s1926_s27 }
  0xf7   :  { %v222_v6 = vld [vmem:[#allocation23 + $0x8] sm:$0xff]  ;;  %v226_v7 = vsel %vm216_vm0, %v221_v4, 0.0  ;;  %v232_v8 = vsel %vm216_vm0, %v223_v5, 0.0  ;;  %v224_v9 = vld [vmem:[#allocation23 + $0x18] sm:$0xff]  ;;  %2064 = vmatprep.subr.bf16.mxu1 %v2703_v2  ;;  %s2648_s21 = scalar_lea.vmem %s1927_s27, 512  ;;  %p2653_p7 = scmp.lt.s32.totalorder %s1927_s27, %s1927_s27 }
  0xf8   :  { %227 = vadd.xlane.f32.xlu0 %v226_v7  ;;  %233 = vadd.xlane.f32.xlu1 %v232_v8  ;;  %v229_v10 = vsel %vm216_vm0, %v222_v6, 0.0  ;;  %v235_v11 = vsel %vm216_vm0, %v224_v9, 0.0  ;;  %p2649_p6 = scmp.ne.s32.totalorder %s1927_s27, %s2648_s21  ;;  %p2654_p8 = scmp.lt.s32.totalorder %s2648_s21, %s2648_s21 }
  0xfa   :  { %p2655_p9 = por %p2654_p8, %p2653_p7 }
  0xfc   :  { %230 = vadd.xlane.f32.xlu0 %v229_v10  ;;  %236 = vadd.xlane.f32.xlu1 %v235_v11  ;;  %p2656_p10 = pnand %p2655_p9, %p2649_p6 }
 0x185   :  { %v228_v12 = vpop.xlane.xlu0 %227  ;;  %v234_v13 = vpop.xlane.xlu1 %233 }
 0x186   :  { %v239_v14 = vmul.f32 0.03125, %v228_v12  ;;  %v241_v15 = vmul.f32 0.03125, %v234_v13 }
 0x188   :  { %v243_v16 = vsub.f32 %v221_v4, %v239_v14  ;;  %v245_v17 = vsub.f32 %v223_v5, %v241_v15  ;;  %v1946_v4 = vld [vmem:[#allocation10] ss:$0 sm:$0xff] }
 0x189   :  { %v231_v18 = vpop.xlane.xlu0 %230  ;;  %v237_v19 = vpop.xlane.xlu1 %236 }
 0x18a   :  { %v240_v20 = vmul.f32 0.03125, %v231_v18  ;;  %v242_v21 = vmul.f32 0.03125, %v237_v19  ;;  %v247_v22 = vmul.f32 %v243_v16, %v243_v16  ;;  %v249_v23 = vmul.f32 %v245_v17, %v245_v17 }
 0x18c   :  { %v244_v24 = vsub.f32 %v222_v6, %v240_v20  ;;  %v246_v25 = vsub.f32 %v224_v9, %v242_v21  ;;  %v251_v26 = vsel %vm216_vm0, %v247_v22, 0.0  ;;  %v257_v27 = vsel %vm216_vm0, %v249_v23, 0.0 }
 0x18d   :  { %252 = vadd.xlane.f32.xlu0 %v251_v26 }
 0x18e   :  { %v248_v28 = vmul.f32 %v244_v24, %v244_v24  ;;  %v250_v29 = vmul.f32 %v246_v25, %v246_v25 }
 0x190   :  { %v254_v30 = vsel %vm216_vm0, %v248_v28, 0.0  ;;  %v260_v31 = vsel %vm216_vm0, %v250_v29, 0.0 }
 0x191   :  { %258 = vadd.xlane.f32.xlu0 %v257_v27  ;;  %255 = vadd.xlane.f32.xlu1 %v254_v30 }
 0x195   :  { %261 = vadd.xlane.f32.xlu1 %v260_v31 }
 0x21a   :  { %v253_v34 = vpop.xlane.xlu0 %252 }
 0x21b   :  { %v263_v35 = vmul.f32 0.03125, %v253_v34 }
 0x21d   :  { %v267_v36 = vadd.f32 1e-05, %v263_v35 }
 0x21e   :  { %v256_v37 = vpop.xlane.xlu1 %255  ;;  %v259_v38 = vpop.xlane.xlu0 %258 }
 0x21f   :  { %2270 = vrsqrt.f32 %v267_v36  ;;  %v264_v39 = vmul.f32 0.03125, %v256_v37  ;;  %v265_v40 = vmul.f32 0.03125, %v259_v38 }
 0x221   :  { %v268_v41 = vadd.f32 1e-05, %v264_v39  ;;  %v269_v42 = vadd.f32 1e-05, %v265_v40 }
 0x222   :  { %v262_v43 = vpop.xlane.xlu1 %261 }
 0x223   :  { %2272 = vrsqrt.f32 %v268_v41  ;;  %v266_v44 = vmul.f32 0.03125, %v262_v43 }
 0x224   :  { %2274 = vrsqrt.f32 %v269_v42 }
 0x225   :  { %v270_v45 = vadd.f32 1e-05, %v266_v44 }
 0x227   :  { %2276 = vrsqrt.f32 %v270_v45 }
 0x229   :  { %v2271_v46 = vpop.eup %2270 }
 0x22a   :  { %v275_v47 = vmul.f32 %v2271_v46, %v243_v16 }
 0x22c   :  { %v286_v52 = vmul.f32 %v1944_v48, %v275_v47 }
 0x22d   :  { %v2273_v49 = vpop.eup %2272 }
 0x22e   :  { %v2275_v50 = vpop.eup %2274  ;;  %v276_v51 = vmul.f32 %v2273_v49, %v244_v24  ;;  %v297_v58 = vadd.f32 %v1945_v54, %v286_v52 }
 0x22f   :  { %v277_v53 = vmul.f32 %v2275_v50, %v245_v17 }
 0x230   :  { %v287_v55 = vmul.f32 %v1944_v48, %v276_v51 }
 0x231   :  { %v2277_v56 = vpop.eup %2276  ;;  %v288_v60 = vmul.f32 %v1944_v48, %v277_v53 }
 0x232   :  { %v278_v57 = vmul.f32 %v2277_v56, %v246_v25  ;;  %v298_v59 = vadd.f32 %v1945_v54, %v287_v55 }
 0x233   :  { %v299_v63 = vadd.f32 %v1945_v54, %v288_v60 }
 0x234   :  { %v301_v61 = vpack.c.bf16 %v298_v59, %v297_v58  ;;  %v289_v62 = vmul.f32 %v1944_v48, %v278_v57 }
 0x236   :  { %2060 = vmatprep.mubr.msk.bf16.mxu1 %vm216_vm0, %v301_v61  ;;  %v300_v0 = vadd.f32 %v1945_v54, %v289_v62 }
 0x238   :  { %v302_v1 = vpack.c.bf16 %v300_v0, %v299_v63 }
 0x23a   :  { %2061 = vmatmul.mubr.msk.bf16.vlgmr.msra.gmra.mrb[0].mxu1 %vm216_vm0, %v302_v1 }
 0x23b   :  { %2066 = vmatprep.mubr.msk.bf16.mxu1 %vm2704_vm1, %v2703_v2 }
 0x30d   :  { %v2062_v3 = vpop.f32.mrb[0].mxu1 }
 0x30e   :  { %v366_v5 = vpop.f32.mrb[1].mxu1  ;;  %v375_v7 = vadd.f32 %v2062_v3, %v1946_v4 }
 0x30f   :  { %v2063_v6 = vpop.f32.mrb[2].mxu1  ;;  %v367_v10 = vadd.f32 %v1946_v4, %v366_v5 }
 0x310   :  { %v378_v8 = vadd.f32 %v2063_v6, %v1946_v4  ;;  %v369_v9 = vpop.f32.mrb[3].mxu1 }
 0x311   :  { %v370_v11 = vadd.f32 %v1946_v4, %v369_v9 }
 0x312   :  { %v2991_v12 = vpack.c.bf16 %v378_v8, %v375_v7 }
 0x313   :  { %v2993_v13 = vpack.c.bf16 %v370_v11, %v367_v10 }
 0x314   :  { %435 = vrot.lane.b32.xlu1 %v2991_v12, %s2705_s12 }
 0x315   :  { %384 = vrot.lane.b32.xlu0 %v2993_v13, %s2705_s12 }
 0x386   :  { %v436_v16 = vpop.permute.xlu1 %435 }
 0x387   :  { %v385_v14 = vpop.permute.xlu0 %384  ;;  %v441_v17 = vsel %vm386_vm2, %v436_v16, 0 }
 0x388   :  { %v391_v15 = vsel %vm386_vm2, %v385_v14, 0 }
 0x389   :  { %2065 = vmatpush3.bf16.xpose.msra.mxu1 %v391_v15 }
 0x38a   :  { %2070 = vmatprep.subr.bf16.mxu1 %v2703_v2 }
 0x390   :  { %2067 = vmatmul.mubr.msk.bf16.vlgmr.msra.gmra.mrb[4].mxu1 %vm386_vm2, %v2993_v13 }
 0x391   :  { %2071 = vmatpush3.bf16.xpose.msra.mxu1 %v441_v17  ;;  %2072 = vmatprep.mubr.msk.bf16.mxu1 %vm2704_vm1, %v2703_v2 }
 0x392   :  { %2076 = vmatprep.subr.bf16.mxu1 %v2703_v2 }
 0x398   :  { %2073 = vmatmul.mubr.msk.bf16.vlgmr.msra.gmra.mrb[8].mxu1 %vm386_vm2, %v2991_v12 }
 0x399   :  { %2078 = vmatprep.mubr.msk.bf16.mxu1 %vm2704_vm1, %v2703_v2 }
 0x463   :  { %v3009_v18 = vpop.f32.mrb[4].mxu1 }
 0x464   :  { %v2068_v19 = vpop.f32.mrb[5].mxu1  ;;  %v485_v39 = vsel %vm484_vm3, %v3009_v18, -inf }
 0x465   :  { %v430_v20 = vpop.f32.mrb[6].mxu1 }
 0x466   :  { %v2069_v21 = vpop.f32.mrb[7].mxu1  ;;  %v488_v38 = vsel %vm484_vm3, %v430_v20, -inf }
 0x46b   :  { %v477_v22 = vpop.f32.mrb[8].mxu1 }
 0x46c   :  { %v2074_v23 = vpop.f32.mrb[9].mxu1  ;;  %v491_v24 = vsel %vm484_vm3, %v477_v22, -inf }
 0x46d   :  { %492 = vmax.xlane.f32.xlu1 %v491_v24  ;;  %v480_v25 = vpop.f32.mrb[10].mxu1 }
 0x46e   :  { %v2075_v26 = vpop.f32.mrb[11].mxu1  ;;  %v494_v27 = vsel %vm484_vm3, %v480_v25, -inf }
 0x46f   :  { %495 = vmax.xlane.f32.xlu0 %v494_v27 }
 0x4fa   :  { %v493_v28 = vpop.xlane.xlu1 %492 }
 0x4fb   :  { %v499_v29 = vsub.f32 %v477_v22, %v493_v28 }
 0x4fc   :  { %v496_v30 = vpop.xlane.xlu0 %495 }
 0x4fd   :  { %v505_v31 = vmul.f32 1.442695, %v499_v29  ;;  %v500_v32 = vsub.f32 %v480_v25, %v496_v30 }
 0x4ff   :  { %2278 = vpow2.f32 %v505_v31  ;;  %v507_v33 = vmul.f32 1.442695, %v500_v32 }
 0x501   :  { %2280 = vpow2.f32 %v507_v33 }
 0x509   :  { %v2279_v34 = vpop.eup %2278 }
 0x50a   :  { %v515_v35 = vsel %vm484_vm3, %v2279_v34, 0.0 }
 0x50b   :  { %v2281_v36 = vpop.eup %2280  ;;  %516 = vadd.xlane.f32.xlu0 %v515_v35 }
 0x50c   :  { %v518_v37 = vsel %vm484_vm3, %v2281_v36, 0.0 }
 0x50d   :  { %519 = vadd.xlane.f32.xlu1 %v518_v37 }
 0x51e   :  { %681 = vrot.lane.b32.xlu1 %v2991_v12, %s2706_s29 }
 0x521   :  { %578 = vrot.lane.b32.xlu0 %v2991_v12, %s2688_s1 }
 0x522   :  { %679 = vrot.lane.b32.xlu1 %v2991_v12, %s2707_s16 }
 0x540   :  { %489 = vmax.xlane.f32.xlu0 %v488_v38 }
 0x546   :  { %486 = vmax.xlane.f32.xlu1 %v485_v39 }
 0x557   :  { %531 = vrot.lane.b32.xlu1 %v2993_v13, %s2688_s1  ;;  %s2708_s1 = smov 80  }
 0x55b   :  { %628 = vrot.lane.b32.xlu1 %v2993_v13, %s2707_s16 }
 0x598   :  { %v517_v40 = vpop.xlane.xlu0 %516 }
 0x599   :  { %2282 = vrcp.f32 %v517_v40 }
 0x59a   :  { %v520_v41 = vpop.xlane.xlu1 %519 }
 0x59b   :  { %2284 = vrcp.f32 %v520_v41 }
 0x59c   :  { %v579_v42 = vpop.permute.xlu0 %578 }
 0x59d   :  { %2083 = vmatpush3.bf16.msra.mxu0 %v579_v42 }
 0x59e   :  { %2094 = vmatprep.subr.bf16.mxu0 %v2703_v2  ;;  %v682_v47 = vpop.permute.xlu1 %681 }
 0x59f   :  { %v687_v49 = vsel %vm386_vm2, %v682_v47, 0 }
 0x5a2   :  { %v680_v50 = vpop.permute.xlu1 %679 }
 0x5a3   :  { %v2283_v43 = vpop.eup %2282 }
 0x5a4   :  { %v527_v45 = vmul.f32 %v2283_v43, %v2279_v34 }
 0x5a5   :  { %v2285_v44 = vpop.eup %2284 }
 0x5a6   :  { %v528_v46 = vmul.f32 %v2285_v44, %v2281_v36 }
 0x5a8   :  { %v530_v48 = vpack.c.bf16 %v528_v46, %v527_v45 }
 0x5aa   :  { %2085 = vmatmul.mubr.msk.bf16.vlgmr.msra.gmra.mrb[0].mxu0 %vm484_vm3, %v530_v48 }
 0x5ab   :  { %2095 = vmatpush3.bf16.xpose.msra.mxu0 %v687_v49  ;;  %2096 = vmatprep.mubr.msk.bf16.mxu0 %vm2704_vm1, %v2703_v2 }
 0x5ac   :  { %2106 = vmatprep.subr.bf16.mxu0 %v2703_v2 }
 0x5b2   :  { %2097 = vmatmul.mubr.msk.bf16.vlgmr.msra.gmra.mrb[4].mxu0 %vm386_vm2, %v680_v50 }
 0x5b3   :  { %2108 = vmatprep.mubr.msk.bf16.mxu0 %vm2704_vm1, %v2703_v2 }
 0x5cd   :  { %v490_v51 = vpop.xlane.xlu0 %489 }
 0x5ce   :  { %v498_v52 = vsub.f32 %v430_v20, %v490_v51 }
 0x5d0   :  { %v503_v55 = vmul.f32 1.442695, %v498_v52 }
 0x5d3   :  { %v487_v53 = vpop.xlane.xlu1 %486 }
 0x5d4   :  { %v497_v54 = vsub.f32 %v3009_v18, %v487_v53 }
 0x5d6   :  { %v501_v56 = vmul.f32 1.442695, %v497_v54 }
 0x5d7   :  { %v532_v57 = vpop.permute.xlu1 %531 }
 0x5d8   :  { %2286 = vpow2.f32 %v501_v56  ;;  %2077 = vmatpush3.bf16.msra.mxu1 %v532_v57 }
 0x5d9   :  { %2088 = vmatprep.subr.bf16.mxu1 %v2703_v2  ;;  %2288 = vpow2.f32 %v503_v55 }
 0x5db   :  { %v629_v21 = vpop.permute.xlu1 %628 }
 0x5e2   :  { %v2287_v58 = vpop.eup %2286 }
 0x5e3   :  { %v509_v59 = vsel %vm484_vm3, %v2287_v58, 0.0  ;;  %v2289_v60 = vpop.eup %2288 }
 0x5e4   :  { %510 = vadd.xlane.f32.xlu0 %v509_v59  ;;  %v512_v61 = vsel %vm484_vm3, %v2289_v60, 0.0 }
 0x5e8   :  { %513 = vadd.xlane.f32.xlu0 %v512_v61 }
 0x5fe   :  { %630 = vrot.lane.b32.xlu0 %v2993_v13, %s2706_s29 }
 0x671   :  { %v511_v62 = vpop.xlane.xlu0 %510 }
 0x672   :  { %2290 = vrcp.f32 %v511_v62 }
 0x675   :  { %v514_v63 = vpop.xlane.xlu0 %513 }
 0x676   :  { %2292 = vrcp.f32 %v514_v63 }
 0x679   :  { %v631_v10 = vpop.permute.xlu0 %630 }
 0x67a   :  { %v636_v14 = vsel %vm386_vm2, %v631_v10, 0 }
 0x67c   :  { %v2291_v1 = vpop.eup %2290 }
 0x67d   :  { %v3041_v0 = vpop.f32.mrb[0].mxu0  ;;  %v525_v8 = vmul.f32 %v2291_v1, %v2287_v58 }
 0x67e   :  { %v2086_v3 = vpop.f32.mrb[1].mxu0 }
 0x67f   :  { %v3043_v4 = vpop.f32.mrb[2].mxu0 }
 0x680   :  { %v2293_v5 = vpop.eup %2292  ;;  %v626_v6 = vpack.c.bf16 %v3043_v4, %v3041_v0  ;;  %v2087_v7 = vpop.f32.mrb[3].mxu0 }
 0x681   :  { %v526_v9 = vmul.f32 %v2293_v5, %v2289_v60 }
 0x683   :  { %v529_v11 = vpack.c.bf16 %v526_v9, %v525_v8 }
 0x685   :  { %2079 = vmatmul.mubr.msk.bf16.vlgmr.msra.gmra.mrb[12].mxu1 %vm484_vm3, %v529_v11  ;;  %v723_v15 = vpop.f32.mrb[4].mxu0 }
 0x686   :  { %2089 = vmatpush3.bf16.xpose.msra.mxu1 %v636_v14  ;;  %v2098_v16 = vpop.f32.mrb[5].mxu0  ;;  %v736_v17 = vsel %vm484_vm3, %v723_v15, -inf  ;;  %2090 = vmatprep.mubr.msk.bf16.mxu1 %vm2704_vm1, %v2703_v2 }
 0x687   :  { %737 = vmax.xlane.f32.xlu1 %v736_v17  ;;  %v726_v18 = vpop.f32.mrb[6].mxu0  ;;  %2100 = vmatprep.subr.bf16.mxu1 %v2703_v2 }
 0x688   :  { %v2099_v19 = vpop.f32.mrb[7].mxu0  ;;  %v739_v20 = vsel %vm484_vm3, %v726_v18, -inf }
 0x689   :  { %740 = vmax.xlane.f32.xlu0 %v739_v20 }
 0x68d   :  { %2091 = vmatmul.mubr.msk.bf16.vlgmr.msra.gmra.mrb[16].mxu1 %vm386_vm2, %v629_v21 }
 0x68e   :  { %2102 = vmatprep.mubr.msk.bf16.mxu1 %vm2704_vm1, %v2703_v2 }
 0x698   :  { %992 = vrot.lane.b32.xlu1 %v2993_v13, %s2708_s1 }
 0x714   :  { %v738_v22 = vpop.xlane.xlu1 %737 }
 0x715   :  { %v744_v23 = vsub.f32 %v723_v15, %v738_v22 }
 0x716   :  { %v741_v24 = vpop.xlane.xlu0 %740 }
 0x717   :  { %v750_v25 = vmul.f32 1.442695, %v744_v23  ;;  %v745_v26 = vsub.f32 %v726_v18, %v741_v24 }
 0x718   :  { %v993_v43 = vpop.permute.xlu1 %992 }
 0x719   :  { %2294 = vpow2.f32 %v750_v25  ;;  %v752_v27 = vmul.f32 1.442695, %v745_v26  ;;  %v998_v53 = vsel %vm386_vm2, %v993_v43, 0 }
 0x71b   :  { %2296 = vpow2.f32 %v752_v27 }
 0x723   :  { %v2295_v28 = vpop.eup %2294 }
 0x724   :  { %v760_v29 = vsel %vm484_vm3, %v2295_v28, 0.0 }
 0x725   :  { %v2297_v30 = vpop.eup %2296  ;;  %761 = vadd.xlane.f32.xlu0 %v760_v29 }
 0x726   :  { %v763_v31 = vsel %vm484_vm3, %v2297_v30, 0.0 }
 0x727   :  { %764 = vadd.xlane.f32.xlu1 %v763_v31 }
 0x738   :  { %990 = vrot.lane.b32.xlu1 %v2993_v13, %s2709_s17 }
 0x73b   :  { %823 = vrot.lane.b32.xlu0 %v2991_v12, %s2710_s0 }
 0x73c   :  { %1043 = vrot.lane.b32.xlu1 %v2991_v12, %s2708_s1 }
 0x73f   :  { %1041 = vrot.lane.b32.xlu0 %v2991_v12, %s2709_s17 }
 0x758   :  { %v3064_v32 = vpop.f32.mrb[12].mxu1 }
 0x759   :  { %v2080_v33 = vpop.f32.mrb[13].mxu1 }
 0x75a   :  { %v3066_v34 = vpop.f32.mrb[14].mxu1 }
 0x75b   :  { %v625_v35 = vpack.c.bf16 %v3066_v34, %v3064_v32  ;;  %v2081_v36 = vpop.f32.mrb[15].mxu1 }
 0x760   :  { %v672_v37 = vpop.f32.mrb[16].mxu1 }
 0x761   :  { %v2092_v38 = vpop.f32.mrb[17].mxu1  ;;  %v730_v39 = vsel %vm484_vm3, %v672_v37, -inf }
 0x762   :  { %731 = vmax.xlane.f32.xlu1 %v730_v39  ;;  %v675_v40 = vpop.f32.mrb[18].mxu1  ;;  %v627_v39 = vld [vmem:[#allocation11] sm:$0xf] }
 0x763   :  { %v2093_v41 = vpop.f32.mrb[19].mxu1  ;;  %v733_v42 = vsel %vm484_vm3, %v675_v40, -inf }
 0x764   :  { %734 = vmax.xlane.f32.xlu0 %v733_v42 }
 0x773   :  { %776 = vrot.lane.b32.xlu1 %v2993_v13, %s2710_s0 }
 0x7b2   :  { %v762_v44 = vpop.xlane.xlu0 %761 }
 0x7b3   :  { %2298 = vrcp.f32 %v762_v44 }
 0x7b4   :  { %v765_v45 = vpop.xlane.xlu1 %764 }
 0x7b5   :  { %2300 = vrcp.f32 %v765_v45 }
 0x7b6   :  { %v824_v46 = vpop.permute.xlu0 %823 }
 0x7b7   :  { %2107 = vmatpush3.bf16.msra.mxu0 %v824_v46 }
 0x7b8   :  { %2124 = vmatprep.subr.bf16.mxu0 %v2703_v2  ;;  %v991_v52 = vpop.permute.xlu1 %990 }
 0x7ba   :  { %v1042_v56 = vpop.permute.xlu0 %1041 }
 0x7bc   :  { %v1044_v54 = vpop.permute.xlu1 %1043 }
 0x7bd   :  { %v2299_v47 = vpop.eup %2298  ;;  %v1049_v55 = vsel %vm386_vm2, %v1044_v54, 0 }
 0x7be   :  { %v772_v49 = vmul.f32 %v2299_v47, %v2295_v28 }
 0x7bf   :  { %v2301_v48 = vpop.eup %2300 }
 0x7c0   :  { %v773_v50 = vmul.f32 %v2301_v48, %v2297_v30 }
 0x7c2   :  { %v775_v51 = vpack.c.bf16 %v773_v50, %v772_v49 }
 0x7c4   :  { %2109 = vmatmul.mubr.msk.bf16.vlgmr.msra.gmra.mrb[8].mxu0 %vm484_vm3, %v775_v51 }
 0x7c5   :  { %2125 = vmatpush3.bf16.xpose.msra.mxu0 %v998_v53  ;;  %2126 = vmatprep.mubr.msk.bf16.mxu0 %vm2704_vm1, %v2703_v2 }
 0x7c6   :  { %2130 = vmatprep.subr.bf16.mxu0 %v2703_v2 }
 0x7cc   :  { %2127 = vmatmul.mubr.msk.bf16.vlgmr.msra.gmra.mrb[12].mxu0 %vm386_vm2, %v991_v52 }
 0x7cd   :  { %2131 = vmatpush3.bf16.xpose.msra.mxu0 %v1049_v55  ;;  %2132 = vmatprep.mubr.msk.bf16.mxu0 %vm2704_vm1, %v2703_v2 }
 0x7ce   :  { %2142 = vmatprep.subr.bf16.mxu0 %v2703_v2 }
 0x7d4   :  { %2133 = vmatmul.mubr.msk.bf16.vlgmr.msra.gmra.mrb[16].mxu0 %vm386_vm2, %v1042_v56 }
 0x7d5   :  { %2144 = vmatprep.mubr.msk.bf16.mxu0 %vm2704_vm1, %v2703_v2 }
 0x7ef   :  { %v732_v57 = vpop.xlane.xlu1 %731 }
 0x7f0   :  { %v742_v58 = vsub.f32 %v672_v37, %v732_v57  ;;  %v872_v37 = vld [vmem:[#allocation11 + $0x4] sm:$0xf] }
 0x7f1   :  { %v735_v59 = vpop.xlane.xlu0 %734  ;;  %v881_v38 = vsel %vm879_vm4, %v872_v37, 0 }
 0x7f2   :  { %v746_v60 = vmul.f32 1.442695, %v742_v58  ;;  %v743_v61 = vsub.f32 %v675_v40, %v735_v59 }
 0x7f3   :  { %v777_v62 = vpop.permute.xlu1 %776 }
 0x7f4   :  { %2302 = vpow2.f32 %v746_v60  ;;  %v748_v63 = vmul.f32 1.442695, %v743_v61  ;;  %2101 = vmatpush3.bf16.msra.mxu1 %v777_v62 }
 0x7f5   :  { %2224 = vmatprep.subr.msk.bf16.mxu1 %vm879_vm4, %v872_v37 }
 0x7f6   :  { %2304 = vpow2.f32 %v748_v63 }
 0x7fe   :  { %v2303_v1 = vpop.eup %2302 }
 0x7ff   :  { %v754_v3 = vsel %vm484_vm3, %v2303_v1, 0.0 }
 0x800   :  { %v2305_v5 = vpop.eup %2304  ;;  %755 = vadd.xlane.f32.xlu0 %v754_v3  ;;  %v939_v3 = vsel %vm879_vm4, %v627_v39, 0 }
 0x801   :  { %v757_v7 = vsel %vm484_vm3, %v2305_v5, 0.0 }
 0x804   :  { %758 = vadd.xlane.f32.xlu0 %v757_v7 }
 0x88d   :  { %v756_v8 = vpop.xlane.xlu0 %755 }
 0x88e   :  { %2306 = vrcp.f32 %v756_v8 }
 0x891   :  { %v759_v9 = vpop.xlane.xlu0 %758 }
 0x892   :  { %2308 = vrcp.f32 %v759_v9 }
 0x897   :  { %v3089_v10 = vpop.f32.mrb[8].mxu0 }
 0x898   :  { %v2110_v11 = vpop.f32.mrb[9].mxu0  ;;  %v2307_v15 = vpop.eup %2306 }
 0x899   :  { %v3091_v14 = vpop.f32.mrb[10].mxu0  ;;  %v770_v19 = vmul.f32 %v2307_v15, %v2303_v1 }
 0x89a   :  { %v871_v16 = vpack.c.bf16 %v3091_v14, %v3089_v10  ;;  %v2111_v17 = vpop.f32.mrb[11].mxu0 }
 0x89c   :  { %v2309_v18 = vpop.eup %2308 }
 0x89d   :  { %v771_v20 = vmul.f32 %v2309_v18, %v2305_v5 }
 0x89f   :  { %v1034_v21 = vpop.f32.mrb[12].mxu0  ;;  %v774_v22 = vpack.c.bf16 %v771_v20, %v770_v19 }
 0x8a0   :  { %v2128_v23 = vpop.f32.mrb[13].mxu0  ;;  %v1092_v24 = vsel %vm484_vm3, %v1034_v21, -inf }
 0x8a1   :  { %v1037_v25 = vpop.f32.mrb[14].mxu0  ;;  %1093 = vmax.xlane.f32.xlu0 %v1092_v24  ;;  %2103 = vmatmul.mubr.msk.bf16.vlgmr.msra.gmra.mrb[20].mxu1 %vm484_vm3, %v774_v22  ;;  %v1234_v22 = vld [vmem:[#allocation11 + $0x8] sm:$0xf] }
 0x8a2   :  { %v2129_v26 = vpop.f32.mrb[15].mxu0  ;;  %v1095_v27 = vsel %vm484_vm3, %v1037_v25, -inf  ;;  %2113 = vmatpush3.bf16.msra.mxu1 %v881_v38  ;;  %v1242_v23 = vsel %vm879_vm4, %v1234_v22, 0 }
 0x8a3   :  { %2225 = vmatprep.subr.msk.bf16.mxu1 %vm879_vm4, %v627_v39 }
 0x8a5   :  { %1096 = vmax.xlane.f32.xlu0 %v1095_v27 }
 0x8a7   :  { %v1085_v28 = vpop.f32.mrb[16].mxu0 }
 0x8a8   :  { %v2134_v29 = vpop.f32.mrb[17].mxu0  ;;  %v1098_v30 = vsel %vm484_vm3, %v1085_v28, -inf }
 0x8a9   :  { %v1088_v31 = vpop.f32.mrb[18].mxu0  ;;  %1099 = vmax.xlane.f32.xlu0 %v1098_v30 }
 0x8aa   :  { %v2135_v33 = vpop.f32.mrb[19].mxu0  ;;  %v1101_v36 = vsel %vm484_vm3, %v1088_v31, -inf }
 0x8ad   :  { %1102 = vmax.xlane.f32.xlu0 %v1101_v36 }
 0x92e   :  { %v1094_v40 = vpop.xlane.xlu0 %1093 }
 0x92f   :  { %v1104_v41 = vsub.f32 %v1034_v21, %v1094_v40 }
 0x931   :  { %v1108_v42 = vmul.f32 1.442695, %v1104_v41 }
 0x932   :  { %v1097_v43 = vpop.xlane.xlu0 %1096 }
 0x933   :  { %2310 = vpow2.f32 %v1108_v42  ;;  %v1105_v44 = vsub.f32 %v1037_v25, %v1097_v43 }
 0x935   :  { %v1110_v45 = vmul.f32 1.442695, %v1105_v44 }
 0x936   :  { %v1100_v46 = vpop.xlane.xlu0 %1099 }
 0x937   :  { %2312 = vpow2.f32 %v1110_v45  ;;  %v1106_v47 = vsub.f32 %v1085_v28, %v1100_v46 }
 0x939   :  { %v1112_v48 = vmul.f32 1.442695, %v1106_v47 }
 0x93a   :  { %v1103_v49 = vpop.xlane.xlu0 %1102 }
 0x93b   :  { %2314 = vpow2.f32 %v1112_v48  ;;  %v1107_v50 = vsub.f32 %v1088_v31, %v1103_v49 }
 0x93d   :  { %v2311_v51 = vpop.eup %2310  ;;  %v1114_v52 = vmul.f32 1.442695, %v1107_v50 }
 0x93e   :  { %v1116_v53 = vsel %vm484_vm3, %v2311_v51, 0.0 }
 0x93f   :  { %2316 = vpow2.f32 %v1114_v52  ;;  %1117 = vadd.xlane.f32.xlu1 %v1116_v53 }
 0x941   :  { %v2313_v54 = vpop.eup %2312 }
 0x942   :  { %v1119_v55 = vsel %vm484_vm3, %v2313_v54, 0.0 }
 0x943   :  { %1120 = vadd.xlane.f32.xlu0 %v1119_v55 }
 0x945   :  { %v2315_v56 = vpop.eup %2314 }
 0x946   :  { %v1122_v57 = vsel %vm484_vm3, %v2315_v56, 0.0 }
 0x947   :  { %1123 = vadd.xlane.f32.xlu0 %v1122_v57 }
 0x949   :  { %v2317_v58 = vpop.eup %2316 }
 0x94a   :  { %v1125_v59 = vsel %vm484_vm3, %v2317_v58, 0.0 }
 0x94b   :  { %1126 = vadd.xlane.f32.xlu0 %v1125_v59 }
 0x950   :  { %1185 = vrot.lane.b32.xlu1 %v2991_v12, %s2711_s15 }
 0x961   :  { %1138 = vrot.lane.b32.xlu0 %v2993_v13, %s2711_s15 }
 0x965   :  { %1299 = vrot.lane.b32.xlu0 %v2993_v13, %s2712_s18 }
 0x969   :  { %1350 = vrot.lane.b32.xlu0 %v2991_v12, %s2712_s18 }
 0x96d   :  { %1297 = vrot.lane.b32.xlu0 %v2993_v13, %s2713_s20 }
 0x971   :  { %1348 = vrot.lane.b32.xlu0 %v2991_v12, %s2713_s20 }
 0x974   :  { %v816_v60 = vpop.f32.mrb[20].mxu1 }
 0x975   :  { %v2104_v61 = vpop.f32.mrb[21].mxu1 }
 0x976   :  { %v819_v62 = vpop.f32.mrb[22].mxu1 }
 0x977   :  { %v870_v63 = vpack.c.bf16 %v819_v62, %v816_v60  ;;  %v2105_v1 = vpop.f32.mrb[23].mxu1 }
 0x979   :  { %2114 = vmatprep.mubr.msk.bf16.mxu1 %vm386_vm2, %v870_v63 }
 0x97a   :  { %2115 = vmatmul.mubr.msk.bf16.vlgmr.msra.gmra.mrb[24].mxu1 %vm386_vm2, %v871_v16 }
 0x97b   :  { %2120 = vmatprep.mubr.msk.bf16.mxu1 %vm386_vm2, %v625_v35  ;;  %2119 = vmatpush3.bf16.msra.mxu1 %v939_v3 }
 0x97c   :  { %2136 = vmatprep.subr.bf16.mxu1 %v2703_v2 }
 0x986   :  { %2121 = vmatmul.mubr.msk.bf16.vlgmr.msra.gmra.mrb[24].mxu1 %vm386_vm2, %v626_v6 }
 0x987   :  { %2138 = vmatprep.mubr.msk.bf16.mxu1 %vm2704_vm1, %v2703_v2 }
 0x9cc   :  { %v1118_v5 = vpop.xlane.xlu1 %1117 }
 0x9cd   :  { %2318 = vrcp.f32 %v1118_v5 }
 0x9d0   :  { %v1186_v7 = vpop.permute.xlu1 %1185  ;;  %v1121_v8 = vpop.xlane.xlu0 %1120 }
 0x9d1   :  { %2320 = vrcp.f32 %v1121_v8  ;;  %2143 = vmatpush3.bf16.msra.mxu0 %v1186_v7 }
 0x9d2   :  { %2154 = vmatprep.subr.bf16.mxu0 %v2703_v2 }
 0x9d4   :  { %v1124_v32 = vpop.xlane.xlu0 %1123 }
 0x9d5   :  { %2322 = vrcp.f32 %v1124_v32 }
 0x9d7   :  { %v2319_v35 = vpop.eup %2318 }
 0x9d8   :  { %v1127_v34 = vpop.xlane.xlu0 %1126  ;;  %v1132_v0 = vmul.f32 %v2319_v35, %v2311_v51 }
 0x9d9   :  { %2324 = vrcp.f32 %v1127_v34 }
 0x9db   :  { %v2321_v9 = vpop.eup %2320 }
 0x9dc   :  { %v1133_v4 = vmul.f32 %v2321_v9, %v2313_v54  ;;  %v1139_v6 = vpop.permute.xlu0 %1138 }
 0x9dd   :  { %2137 = vmatpush3.bf16.msra.mxu1 %v1139_v6 }
 0x9de   :  { %v1136_v10 = vpack.c.bf16 %v1133_v4, %v1132_v0  ;;  %2226 = vmatprep.subr.msk.bf16.mxu1 %vm879_vm4, %v1234_v22 }
 0x9df   :  { %v2323_v11 = vpop.eup %2322 }
 0x9e0   :  { %2139 = vmatmul.mubr.msk.bf16.vlgmr.msra.gmra.mrb[28].mxu1 %vm484_vm3, %v1136_v10  ;;  %v1300_v15 = vpop.permute.xlu0 %1299  ;;  %v1134_v16 = vmul.f32 %v2323_v11, %v2315_v56 }
 0x9e1   :  { %v1305_v19 = vsel %vm386_vm2, %v1300_v15, 0  ;;  %2149 = vmatpush3.bf16.msra.mxu1 %v1242_v23 }
 0x9e2   :  { %2160 = vmatprep.subr.bf16.mxu1 %v2703_v2 }
 0x9e3   :  { %v2325_v14 = vpop.eup %2324 }
 0x9e4   :  { %v1135_v17 = vmul.f32 %v2325_v14, %v2317_v58  ;;  %v1351_v20 = vpop.permute.xlu0 %1350 }
 0x9e5   :  { %v1356_v37 = vsel %vm386_vm2, %v1351_v20, 0  ;;  %v1541_v20 = vld [vmem:[#allocation11 + $0xc] sm:$0xf] }
 0x9e6   :  { %v1137_v18 = vpack.c.bf16 %v1135_v17, %v1134_v16 }
 0x9e8   :  { %2145 = vmatmul.mubr.msk.bf16.vlgmr.msra.gmra.mrb[20].mxu0 %vm484_vm3, %v1137_v18  ;;  %v1298_v21 = vpop.permute.xlu0 %1297 }
 0x9e9   :  { %2155 = vmatpush3.bf16.xpose.msra.mxu0 %v1305_v19  ;;  %2156 = vmatprep.mubr.msk.bf16.mxu0 %vm2704_vm1, %v2703_v2 }
 0x9ea   :  { %2166 = vmatprep.subr.bf16.mxu0 %v2703_v2 }
 0x9ec   :  { %v1349_v44 = vpop.permute.xlu0 %1348 }
 0x9f0   :  { %2157 = vmatmul.mubr.msk.bf16.vlgmr.msra.gmra.mrb[24].mxu0 %vm386_vm2, %v1298_v21  ;;  %v1549_v21 = vsel %vm879_vm4, %v1541_v20, 0 }
 0x9f1   :  { %2168 = vmatprep.mubr.msk.bf16.mxu0 %vm2704_vm1, %v2703_v2 }
 0xab3   :  { %v1178_v24 = vpop.f32.mrb[28].mxu1 }
 0xab4   :  { %v2140_v25 = vpop.f32.mrb[29].mxu1 }
 0xab5   :  { %v1181_v26 = vpop.f32.mrb[30].mxu1 }
 0xab6   :  { %v1232_v27 = vpack.c.bf16 %v1181_v26, %v1178_v24  ;;  %v2141_v28 = vpop.f32.mrb[31].mxu1 }
 0xab8   :  { %2150 = vmatprep.mubr.msk.bf16.mxu1 %vm386_vm2, %v1232_v27 }
 0xabb   :  { %v1225_v29 = vpop.f32.mrb[20].mxu0 }
 0xabc   :  { %v2146_v30 = vpop.f32.mrb[21].mxu0 }
 0xabd   :  { %v1228_v31 = vpop.f32.mrb[22].mxu0 }
 0xabe   :  { %v1233_v33 = vpack.c.bf16 %v1228_v31, %v1225_v29  ;;  %v2147_v36 = vpop.f32.mrb[23].mxu0 }
 0xabf   :  { %v1975_v36 = vld [vmem:[#allocation13] ss:$0 sm:$0xff] }
 0xac0   :  { %2151 = vmatmul.mubr.msk.bf16.vlgmr.msra.gmra.mrb[24].mxu1 %vm386_vm2, %v1233_v33 }
 0xac1   :  { %2161 = vmatpush3.bf16.xpose.msra.mxu1 %v1356_v37  ;;  %2162 = vmatprep.mubr.msk.bf16.mxu1 %vm2704_vm1, %v2703_v2 }
 0xac2   :  { %2172 = vmatprep.subr.bf16.mxu1 %v2703_v2 }
 0xac3   :  { %v1341_v38 = vpop.f32.mrb[24].mxu0 }
 0xac4   :  { %v2158_v39 = vpop.f32.mrb[25].mxu0  ;;  %v1399_v40 = vsel %vm484_vm3, %v1341_v38, -inf }
 0xac5   :  { %1400 = vmax.xlane.f32.xlu0 %v1399_v40  ;;  %v1344_v41 = vpop.f32.mrb[26].mxu0  ;;  %v2359_v40 = vld [vmem:[#allocation23] sm:$0xff] }
 0xac6   :  { %v2159_v42 = vpop.f32.mrb[27].mxu0  ;;  %v1402_v43 = vsel %vm484_vm3, %v1344_v41, -inf }
 0xac7   :  { %1403 = vmax.xlane.f32.xlu1 %v1402_v43 }
 0xac8   :  { %2163 = vmatmul.mubr.msk.bf16.vlgmr.msra.gmra.mrb[32].mxu1 %vm386_vm2, %v1349_v44 }
 0xac9   :  { %2174 = vmatprep.mubr.msk.bf16.mxu1 %vm2704_vm1, %v2703_v2 }
 0xb52   :  { %v1401_v45 = vpop.xlane.xlu0 %1400 }
 0xb53   :  { %v1411_v46 = vsub.f32 %v1341_v38, %v1401_v45  ;;  %v2358_v38 = vld [vmem:[#allocation23 + $0x10] sm:$0xff]  ;;  %v2360_v45 = vld [vmem:[#allocation23 + $0x18] sm:$0xff] }
 0xb54   :  { %v1404_v50 = vpop.xlane.xlu1 %1403 }
 0xb55   :  { %v1415_v47 = vmul.f32 1.442695, %v1411_v46  ;;  %v1412_v51 = vsub.f32 %v1344_v41, %v1404_v50 }
 0xb57   :  { %2326 = vpow2.f32 %v1415_v47  ;;  %v1417_v52 = vmul.f32 1.442695, %v1412_v51  ;;  %v2361_v47 = vld [vmem:[#allocation23 + $0x8] sm:$0xff] }
 0xb59   :  { %2328 = vpow2.f32 %v1417_v52 }
 0xb61   :  { %v2327_v48 = vpop.eup %2326 }
 0xb62   :  { %v1423_v49 = vsel %vm484_vm3, %v2327_v48, 0.0 }
 0xb63   :  { %1424 = vadd.xlane.f32.xlu1 %v1423_v49  ;;  %v2329_v58 = vpop.eup %2328 }
 0xb64   :  { %v1426_v59 = vsel %vm484_vm3, %v2329_v58, 0.0 }
 0xb9b   :  { %v1392_v53 = vpop.f32.mrb[32].mxu1 }
 0xb9c   :  { %v2164_v54 = vpop.f32.mrb[33].mxu1  ;;  %v1405_v55 = vsel %vm484_vm3, %v1392_v53, -inf }
 0xb9d   :  { %1406 = vmax.xlane.f32.xlu0 %v1405_v55  ;;  %v1395_v56 = vpop.f32.mrb[34].mxu1 }
 0xb9e   :  { %v2165_v57 = vpop.f32.mrb[35].mxu1  ;;  %v1408_v2 = vsel %vm484_vm3, %v1395_v56, -inf }
 0xba1   :  { %1409 = vmax.xlane.f32.xlu0 %v1408_v2 }
 0xba5   :  { %1427 = vadd.xlane.f32.xlu0 %v1426_v59 }
 0xbf0   :  { %v1425_v35 = vpop.xlane.xlu1 %1424 }
 0xc2a   :  { %v1407_v60 = vpop.xlane.xlu0 %1406 }
 0xc2b   :  { %v1413_v61 = vsub.f32 %v1392_v53, %v1407_v60 }
 0xc2d   :  { %v1419_v62 = vmul.f32 1.442695, %v1413_v61 }
 0xc2e   :  { %v1410_v63 = vpop.xlane.xlu0 %1409 }
 0xc2f   :  { %2330 = vpow2.f32 %v1419_v62  ;;  %v1414_v1 = vsub.f32 %v1395_v56, %v1410_v63 }
 0xc31   :  { %v1421_v3 = vmul.f32 1.442695, %v1414_v1 }
 0xc32   :  { %v1428_v34 = vpop.xlane.xlu0 %1427 }
 0xc33   :  { %2332 = vpow2.f32 %v1421_v3 }
 0xc34   :  { %2334 = vrcp.f32 %v1428_v34 }
 0xc35   :  { %2336 = vrcp.f32 %v1425_v35 }
 0xc39   :  { %v2331_v5 = vpop.eup %2330 }
 0xc3a   :  { %v1429_v7 = vsel %vm484_vm3, %v2331_v5, 0.0 }
 0xc3b   :  { %1430 = vadd.xlane.f32.xlu1 %v1429_v7 }
 0xc3d   :  { %v2333_v8 = vpop.eup %2332 }
 0xc3e   :  { %v1432_v32 = vsel %vm484_vm3, %v2333_v8, 0.0  ;;  %v2335_v9 = vpop.eup %2334 }
 0xc3f   :  { %1433 = vadd.xlane.f32.xlu0 %v1432_v32  ;;  %v2337_v4 = vpop.eup %2336  ;;  %v1440_v6 = vmul.f32 %v2335_v9, %v2329_v58 }
 0xc40   :  { %v1439_v10 = vmul.f32 %v2337_v4, %v2327_v48 }
 0xc42   :  { %v1443_v15 = vpack.c.bf16 %v1440_v6, %v1439_v10  ;;  %v2260_v6 = vld [vmem:[#allocation17] sm:$0xff]   ;;  %v2261_v10 = vld [vmem:[#allocation17 + $0x8] sm:$0xff]  }
 0xc4c   :  { %1445 = vrot.lane.b32.xlu1 %v2993_v13, %s2714_s7 }
 0xc55   :  { %1492 = vrot.lane.b32.xlu0 %v2991_v12, %s2714_s7 }
 0xcc8   :  { %v1431_v0 = vpop.xlane.xlu1 %1430 }
 0xcc9   :  { %2338 = vrcp.f32 %v1431_v0 }
 0xccc   :  { %v1446_v11 = vpop.permute.xlu1 %1445  ;;  %v1434_v14 = vpop.xlane.xlu0 %1433 }
 0xccd   :  { %2340 = vrcp.f32 %v1434_v14  ;;  %2167 = vmatpush3.bf16.msra.mxu0 %v1446_v11 }
 0xcce   :  { %2184 = vmatprep.subr.bf16.mxu0 %v2260_v6 }
 0xcd0   :  { %2169 = vmatmul.mubr.msk.bf16.vlgmr.msra.gmra.mrb[28].mxu0 %vm484_vm3, %v1443_v15  ;;  %v1493_v13 = vpop.permute.xlu0 %1492 }
 0xcd1   :  { %2173 = vmatpush3.bf16.msra.mxu1 %v1493_v13  ;;  %2185 = vmatpush3.bf16.msra.mxu0 %v2260_v6 }
 0xcd2   :  { %2227 = vmatprep.subr.msk.bf16.mxu1 %vm879_vm4, %v1541_v20  ;;  %2186 = vmatprep.subr.bf16.mxu0 %v2261_v10 }
 0xcd3   :  { %v2339_v12 = vpop.eup %2338 }
 0xcd4   :  { %v1441_v17 = vmul.f32 %v2339_v12, %v2331_v5 }
 0xcd5   :  { %2187 = vmatpush3.bf16.msra.mxu0 %v2261_v10 }
 0xcd7   :  { %v2341_v16 = vpop.eup %2340 }
 0xcd8   :  { %v1442_v18 = vmul.f32 %v2341_v16, %v2333_v8 }
 0xcda   :  { %v1444_v19 = vpack.c.bf16 %v1442_v18, %v1441_v17 }
 0xcdc   :  { %2175 = vmatmul.mubr.msk.bf16.vlgmr.msra.gmra.mrb[36].mxu1 %vm484_vm3, %v1444_v19 }
 0xcdd   :  { %2179 = vmatpush3.bf16.msra.mxu1 %v1549_v21 }
 0xda3   :  { %v1485_v22 = vpop.f32.mrb[28].mxu0 }
 0xda4   :  { %v2170_v23 = vpop.f32.mrb[29].mxu0 }
 0xda5   :  { %v1488_v24 = vpop.f32.mrb[30].mxu0 }
 0xda6   :  { %v1539_v25 = vpack.c.bf16 %v1488_v24, %v1485_v22  ;;  %v2171_v26 = vpop.f32.mrb[31].mxu0  ;;  %v1976_v24 = vld [vmem:[#allocation14] ss:$0 sm:$0xff] }
 0xda8   :  { %2180 = vmatprep.mubr.msk.bf16.mxu1 %vm386_vm2, %v1539_v25 }
 0xdaf   :  { %v1532_v27 = vpop.f32.mrb[36].mxu1 }
 0xdb0   :  { %v2176_v28 = vpop.f32.mrb[37].mxu1 }
 0xdb1   :  { %v1535_v29 = vpop.f32.mrb[38].mxu1 }
 0xdb2   :  { %v1540_v30 = vpack.c.bf16 %v1535_v29, %v1532_v27  ;;  %v2177_v31 = vpop.f32.mrb[39].mxu1 }
 0xdb4   :  { %2181 = vmatmul.mubr.msk.bf16.vlgmr.msra.gmra.mrb[24].mxu1 %vm386_vm2, %v1540_v30  ;;  %v1977_v30 = vld [vmem:[#allocation16] ss:$0 sm:$0xff] }
 0xe87   :  { %v2182_v33 = vpop.f32.mrb[24].mxu1 }
 0xe88   :  { %v1585_v37 = vpop.f32.mrb[25].mxu1  ;;  %v1606_v39 = vadd.f32 %v2358_v38, %v2182_v33 }
 0xe89   :  { %v1604_v41 = vadd.f32 %v2359_v40, %v1585_v37  ;;  %v2183_v42 = vpop.f32.mrb[26].mxu1 }
 0xe8a   :  { %v1588_v43 = vpop.f32.mrb[27].mxu1  ;;  %v1607_v46 = vadd.f32 %v2360_v45, %v2183_v42  ;;  %v3170_v49 = vadd.f32 %v1975_v36, %v1606_v39 }
 0xe8b   :  { %v3168_v44 = vadd.f32 %v1975_v36, %v1604_v41  ;;  %v1605_v48 = vadd.f32 %v2361_v47, %v1588_v43  ;;  %v2262_v47 = vld [vmem:[#allocation20] sm:$0xff]  }
 0xe8c   :  { %v3176_v52 = vadd.f32 %v1975_v36, %v1607_v46  ;;  %v1625_v54 = vsel %vm216_vm0, %v3170_v49, 0.0  ;;  %2192 = vmatprep.subr.bf16.mxu0 %v2262_v47 }
 0xe8d   :  { %v3172_v50 = vadd.f32 %v1975_v36, %v1605_v48  ;;  %v1619_v51 = vsel %vm216_vm0, %v3168_v44, 0.0  ;;  %v2263_v48 = vld [vmem:[#allocation20 + $0x8] sm:$0xff]  }
 0xe8e   :  { %1620 = vadd.xlane.f32.xlu1 %v1619_v51  ;;  %v1628_v55 = vsel %vm216_vm0, %v3176_v52, 0.0  ;;  %v2264_v51 = vld [vmem:[#allocation20 + $0x10] sm:$0xff]  }
 0xe8f   :  { %v1622_v53 = vsel %vm216_vm0, %v3172_v50, 0.0 }
 0xe90   :  { %1623 = vadd.xlane.f32.xlu0 %v1622_v53  ;;  %v2265_v53 = vld [vmem:[#allocation20 + $0x18] sm:$0xff]  }
 0xe92   :  { %1626 = vadd.xlane.f32.xlu1 %v1625_v54  ;;  %v2266_v54 = vld [vmem:[#allocation20 + $0x20] sm:$0xff]  }
 0xe94   :  { %1629 = vadd.xlane.f32.xlu0 %v1628_v55  ;;  %v2267_v55 = vld [vmem:[#allocation20 + $0x28] sm:$0xff]  }
 0xf1b   :  { %v1621_v56 = vpop.xlane.xlu1 %1620 }
 0xf1c   :  { %v1631_v57 = vmul.f32 0.03125, %v1621_v56  ;;  %v2268_v56 = vld [vmem:[#allocation20 + $0x30] sm:$0xff]  }
 0xf1d   :  { %v1624_v2 = vpop.xlane.xlu0 %1623 }
 0xf1e   :  { %v1635_v58 = vsub.f32 %v3168_v44, %v1631_v57  ;;  %v1632_v59 = vmul.f32 0.03125, %v1624_v2  ;;  %v2269_v57 = vld [vmem:[#allocation20 + $0x38] sm:$0xff]  }
 0xf1f   :  { %v1627_v60 = vpop.xlane.xlu1 %1626 }
 0xf20   :  { %v1636_v61 = vsub.f32 %v3172_v50, %v1632_v59  ;;  %v1633_v62 = vmul.f32 0.03125, %v1627_v60  ;;  %v1639_v63 = vmul.f32 %v1635_v58, %v1635_v58 }
 0xf21   :  { %v1630_v1 = vpop.xlane.xlu0 %1629 }
 0xf22   :  { %v1637_v3 = vsub.f32 %v3170_v49, %v1633_v62  ;;  %v1634_v5 = vmul.f32 0.03125, %v1630_v1  ;;  %v1643_v7 = vsel %vm216_vm0, %v1639_v63, 0.0  ;;  %v1640_v8 = vmul.f32 %v1636_v61, %v1636_v61 }
 0xf23   :  { %1644 = vadd.xlane.f32.xlu1 %v1643_v7 }
 0xf24   :  { %v1638_v32 = vsub.f32 %v3176_v52, %v1634_v5  ;;  %v1646_v34 = vsel %vm216_vm0, %v1640_v8, 0.0  ;;  %v1641_v35 = vmul.f32 %v1637_v3, %v1637_v3 }
 0xf25   :  { %1647 = vadd.xlane.f32.xlu0 %v1646_v34 }
 0xf26   :  { %v1649_v9 = vsel %vm216_vm0, %v1641_v35, 0.0  ;;  %v1642_v0 = vmul.f32 %v1638_v32, %v1638_v32 }
 0xf27   :  { %1650 = vadd.xlane.f32.xlu1 %v1649_v9 }
 0xf28   :  { %v1652_v4 = vsel %vm216_vm0, %v1642_v0, 0.0 }
 0xf29   :  { %1653 = vadd.xlane.f32.xlu0 %v1652_v4 }
 0xfb0   :  { %v1645_v11 = vpop.xlane.xlu1 %1644 }
 0xfb1   :  { %v1655_v14 = vmul.f32 0.03125, %v1645_v11 }
 0xfb2   :  { %v1648_v15 = vpop.xlane.xlu0 %1647 }
 0xfb3   :  { %v1659_v13 = vadd.f32 1e-05, %v1655_v14  ;;  %v1656_v12 = vmul.f32 0.03125, %v1648_v15 }
 0xfb4   :  { %v1651_v16 = vpop.xlane.xlu1 %1650 }
 0xfb5   :  { %2342 = vrsqrt.f32 %v1659_v13  ;;  %v1660_v17 = vadd.f32 1e-05, %v1656_v12  ;;  %v1657_v18 = vmul.f32 0.03125, %v1651_v16  ;;  %v1985_v16 = vld [vmem:[#allocation22] ss:$0 sm:$0xff] }
 0xfb6   :  { %v1654_v19 = vpop.xlane.xlu0 %1653 }
 0xfb7   :  { %2344 = vrsqrt.f32 %v1660_v17  ;;  %v1661_v20 = vadd.f32 1e-05, %v1657_v18  ;;  %v1658_v21 = vmul.f32 0.03125, %v1654_v19 }
 0xfb9   :  { %2346 = vrsqrt.f32 %v1661_v20  ;;  %v1662_v22 = vadd.f32 1e-05, %v1658_v21 }
 0xfbb   :  { %2348 = vrsqrt.f32 %v1662_v22 }
 0xfbf   :  { %v2343_v23 = vpop.eup %2342 }
 0xfc0   :  { %v1667_v25 = vmul.f32 %v2343_v23, %v1635_v58  ;;  %v1978_v58 = vld [vmem:[#allocation19] ss:$0 sm:$0xff] }
 0xfc1   :  { %v2345_v26 = vpop.eup %2344 }
 0xfc2   :  { %v1668_v27 = vmul.f32 %v2345_v26, %v1636_v61  ;;  %v1678_v28 = vmul.f32 %v1976_v24, %v1667_v25 }
 0xfc3   :  { %v2347_v29 = vpop.eup %2346 }
 0xfc4   :  { %v1669_v31 = vmul.f32 %v2347_v29, %v1637_v3  ;;  %v1679_v33 = vmul.f32 %v1976_v24, %v1668_v27  ;;  %v1689_v39 = vadd.f32 %v1977_v30, %v1678_v28 }
 0xfc5   :  { %v2349_v36 = vpop.eup %2348 }
 0xfc6   :  { %v1680_v37 = vmul.f32 %v1976_v24, %v1669_v31  ;;  %v1670_v38 = vmul.f32 %v2349_v36, %v1638_v32  ;;  %v1690_v40 = vadd.f32 %v1977_v30, %v1679_v33 }
 0xfc8   :  { %v1681_v41 = vmul.f32 %v1976_v24, %v1670_v38  ;;  %v1693_v42 = vpack.c.bf16 %v1690_v40, %v1689_v39  ;;  %v1691_v43 = vadd.f32 %v1977_v30, %v1680_v37 }
 0xfca   :  { %2188 = vmatprep.mubr.msk.bf16.mxu0 %vm216_vm0, %v1693_v42  ;;  %v1692_v45 = vadd.f32 %v1977_v30, %v1681_v41 }
 0xfcc   :  { %v1694_v46 = vpack.c.bf16 %v1692_v45, %v1691_v43 }
 0xfce   :  { %2189 = vmatmul.mubr.msk.bf16.vlgmr.msra.gmra.mrb[32].mxu0 %vm216_vm0, %v1694_v46 }
 0xfcf   :  { %2193 = vmatpush3.bf16.msra.mxu0 %v2262_v47 }
 0xfd0   :  { %2194 = vmatprep.subr.bf16.mxu0 %v2263_v48 }
 0xfd3   :  { %2195 = vmatpush3.bf16.msra.mxu0 %v2263_v48 }
 0xfd4   :  { %2196 = vmatprep.subr.bf16.mxu0 %v2264_v51 }
 0xfd7   :  { %2197 = vmatpush3.bf16.msra.mxu0 %v2264_v51 }
 0xfd8   :  { %2198 = vmatprep.subr.bf16.mxu0 %v2265_v53 }
 0xfdb   :  { %2199 = vmatpush3.bf16.msra.mxu0 %v2265_v53 }
 0xfdc   :  { %2200 = vmatprep.subr.bf16.mxu0 %v2266_v54 }
 0xfdf   :  { %2201 = vmatpush3.bf16.msra.mxu0 %v2266_v54 }
 0xfe0   :  { %2202 = vmatprep.subr.bf16.mxu0 %v2267_v55 }
 0xfe3   :  { %2203 = vmatpush3.bf16.msra.mxu0 %v2267_v55 }
 0xfe4   :  { %2204 = vmatprep.subr.bf16.mxu0 %v2268_v56 }
 0xfe7   :  { %2205 = vmatpush3.bf16.msra.mxu0 %v2268_v56 }
 0xfe8   :  { %2206 = vmatprep.subr.bf16.mxu0 %v2269_v57 }
 0xfeb   :  { %2207 = vmatpush3.bf16.msra.mxu0 %v2269_v57 }
0x10a1   :  { %v2190_v2 = vpop.f32.mrb[32].mxu0 }
0x10a2   :  { %v1758_v59 = vpop.f32.mrb[33].mxu0  ;;  %v1767_v61 = vadd.f32 %v2190_v2, %v1978_v58 }
0x10a3   :  { %v2191_v60 = vpop.f32.mrb[34].mxu0  ;;  %v1759_v1 = vadd.f32 %v1978_v58, %v1758_v59 }
0x10a4   :  { %v1770_v62 = vadd.f32 %v2191_v60, %v1978_v58  ;;  %v1761_v63 = vpop.f32.mrb[35].mxu0 }
0x10a5   :  { %v1762_v3 = vadd.f32 %v1978_v58, %v1761_v63 }
0x10a6   :  { %v1774_v5 = vpack.c.bf16 %v1770_v62, %v1767_v61 }
0x10a7   :  { %v1773_v7 = vpack.c.bf16 %v1762_v3, %v1759_v1 }
0x10a8   :  { %v1984_v8 = vmul.bf16 3218784218, %v1774_v5 }
0x10a9   :  { %v1983_v32 = vmul.bf16 3218784218, %v1773_v7 }
0x10aa   :  { %v1783_v34 = vmul.bf16 1069105081, %v1984_v8 }
0x10ab   :  { %v1780_v35 = vmul.bf16 1069105081, %v1983_v32 }
0x10ac   :  { %2350 = vpow.bf16 %v1783_v34 }
0x10ad   :  { %2352 = vpow.bf16 %v1780_v35 }
0x10b7   :  { %v2351_v9 = vpop.eup %2350 }
0x10b8   :  { %v2353_v0 = vpop.eup %2352  ;;  %v1786_v4 = vadd.bf16 1065369472, %v2351_v9 }
0x10b9   :  { %v1785_v6 = vadd.bf16 1065369472, %v2353_v0 }
0x10ba   :  { %2354 = vrcp.bf16 %v1786_v4 }
0x10bb   :  { %2356 = vrcp.bf16 %v1785_v6 }
0x10c5   :  { %v2355_v10 = vpop.eup %2354 }
0x10c6   :  { %v2357_v11 = vpop.eup %2356  ;;  %v1790_v14 = vmul.bf16 1065369472, %v2355_v10 }
0x10c7   :  { %v1788_v15 = vmul.bf16 1065369472, %v2357_v11 }
0x10c8   :  { %v1792_v12 = vmul.bf16 %v1790_v14, %v1774_v5 }
0x10c9   :  { %v1791_v13 = vmul.bf16 %v1788_v15, %v1773_v7 }
0x10cb   :  { %2208 = vmatprep.mubr.bf16.mxu0 %v1791_v13 }
0x10cc   :  { %2209 = vmatmul.mubr.bf16.vlgmr.msra.gmra.mrb[36].mxu0 %v1792_v12 }
0x119f   :  { %v2210_v17 = vpop.f32.mrb[36].mxu0 }
0x11a0   :  { %v1907_v18 = vadd.f32 %v2210_v17, %v1985_v16  ;;  %v1898_v19 = vpop.f32.mrb[37].mxu0 }
0x11a1   :  { %v1899_v20 = vadd.f32 %v1985_v16, %v1898_v19  ;;  %v2211_v21 = vpop.f32.mrb[38].mxu0 }
0x11a2   :  { %v1915_v22 = vadd.f32 %v1907_v18, %v3170_v49  ;;  %v1910_v23 = vadd.f32 %v2211_v21, %v1985_v16  ;;  %v1901_v24 = vpop.f32.mrb[39].mxu0 }
0x11a3   :  { %v1913_v25 = vadd.f32 %v1899_v20, %v3168_v44  ;;  %v1902_v26 = vadd.f32 %v1985_v16, %v1901_v24 }
0x11a4   :  { %1919 = vst.msk [vmem:[#allocation23 + $0x10] sm:$0xff] %vm216_vm0, %v1915_v22  ;;  %v1916_v27 = vadd.f32 %v1910_v23, %v3176_v52 }
0x11a5   :  { %1917 = vst.msk [vmem:[#allocation23] sm:$0xff] %vm216_vm0, %v1913_v25  ;;  %v1914_v28 = vadd.f32 %v1902_v26, %v3172_v50 }
0x11a6   :  { %1920 = vst.msk [vmem:[#allocation23 + $0x18] sm:$0xff] %vm216_vm0, %v1916_v27 }
0x11a7   :  { %1918 = vst.msk [vmem:[#allocation23 + $0x8] sm:$0xff] %vm216_vm0, %v1914_v28 }
0x11a8   :  { %2659 = shalt.err (!%p2656_p10)
}
0x11a9   :  { %s2660_s22 = scalar_lea.hbm %s3230_s13, 512 }
0x11aa   :  { %p2661_p11 = scmp.ne.s32.totalorder %s3230_s13, %s2660_s22  ;;  %p2664_p12 = scmp.lt.u32.totalorder %s2660_s22, %s3230_s13 }
0x11ac   :  { %p2666_p13 = pnand %p2664_p12, %p2661_p11 }
0x11ae   :  { %2669 = shalt.err (!%p2666_p13)
}
0x11af   :  { %1932 = dma.vmem_to_hbm [thread:$0]  %s1927_s27, 512, %s3230_s13, [#allocation4], %s2695_s11, %s2695_s11, %s2696_s26  }
0x11b0   :  { %2684 = dma.done.wait [#allocation4], 512  }
0x11b1   :  { %2685 = vsyncadd [#allocation4], 4294966784 }
0x11b2   :  { %1936 = vsyncpa [#allocation3], 1 }
0x11b3   :  { %1937 = vsyncpa [#allocation6], 1 }
0x11b4   :  { %1938 = vsyncpa [#allocation9], 1 }
0x11b5   :  { %1939 = vsyncpa [#allocation12], 1 }
0x11b6   :  { %1940 = vsyncpa [#allocation15], 1 }
0x11b7   :  { %1941 = vsyncpa [#allocation18], 1 }
0x11b8   :  { %1942 = vsyncpa [#allocation21], 1 }
0x11b9   :  { %1943 = vsyncpa [#allocation4], 1 }

</bundles_post_ra>
